<compile_context>
chip_gen: v5e
topology: v5e:2x2
jax: 0.10.0
libtpu: 0.0.40
codegen_flags: <defaults>
</compile_context>

<pallas_src>
import jax
import jax.numpy as jnp
from jax import lax
from jax.experimental import pallas as pl
from jax.experimental.pallas import tpu as pltpu


def criss_cross_attention(x, wq, bq, wk, bk, wv, bv, gamma):
    """x: (N, C, H, W). wq/wk: (C//4, C, 1, 1), wv: (C, C, 1, 1), biases 1-D, gamma: (1,)."""
    N, C, H, W = x.shape
    Cq = wq.shape[0]
    HW = H * W
    CqP = ((Cq + 7) // 8) * 8          # pad q/k channel groups to 8 sublanes
    KP = 2 * CqP + C                   # fused projection output rows

    x2 = x.reshape(N, C, HW)

    # --- fused projection weight / bias (padded rows are exactly zero) ------
    w_all = jnp.zeros((KP, C), jnp.float32)
    w_all = w_all.at[0:Cq].set(wq.reshape(Cq, C).astype(jnp.float32))
    w_all = w_all.at[CqP:CqP + Cq].set(wk.reshape(Cq, C).astype(jnp.float32))
    w_all = w_all.at[2 * CqP:].set(wv.reshape(C, C).astype(jnp.float32))
    b_all = jnp.zeros((KP, 1), jnp.float32)
    b_all = b_all.at[0:Cq, 0].set(bq.astype(jnp.float32))
    b_all = b_all.at[CqP:CqP + Cq, 0].set(bk.astype(jnp.float32))
    b_all = b_all.at[2 * CqP:, 0].set(bv.astype(jnp.float32))

    # --- additive criss-cross log-multiplicity mask (symmetric, bf16) -------
    # 0 on same-row / same-col keys, ln(2) at the self key (it is counted in
    # both energy_H and energy_W), -1e9 everywhere else.
    idx = jnp.arange(HW)
    row = idx // W
    col = idx % W
    cnt = ((row[:, None] == row[None, :]).astype(jnp.float32)
           + (col[:, None] == col[None, :]).astype(jnp.float32))      # 0,1,2
    mask_add = jnp.where(cnt > 0.0,
                         jnp.log(jnp.maximum(cnt, 1.0)),
                         -1e9).astype(jnp.bfloat16)                   # (HW, HW)

    gamma1 = gamma.reshape(-1).astype(jnp.float32)                    # (1,)

    def _cca_kernel(gamma_ref, w_ref, b_ref, mask_ref, x_ref, o_ref):
        # gamma_ref : SMEM (1,)        residual gate
        # w_ref     : VMEM (KP, C)     fused q/k/v 1x1-conv weights
        # b_ref     : VMEM (KP, 1)     fused biases
        # mask_ref  : VMEM (HW, HW)    additive bf16 criss-cross mask
        # x_ref/o_ref: VMEM (C, HW)    one batch element, spatial on lanes
        x2d = x_ref[...].astype(jnp.float32)                          # (C, HW)

        # Fused Q/K/V projection: one (KP, C) @ (C, HW) MXU matmul.
        proj = jnp.dot(w_ref[...], x2d,
                       preferred_element_type=jnp.float32) + b_ref[...]   # (KP, HW)
        q2 = proj[0:CqP]               # (CqP, HW)  padded rows are exactly 0
        k2 = proj[CqP:2 * CqP]         # (CqP, HW)
        v2 = proj[2 * CqP:]            # (C,  HW)

        # Energies with keys on sublanes / queries on lanes (trans_a matmul):
        #   s[b, a] = sum_c k2[c, b] * q2[c, a]
        s = lax.dot_general(k2, q2, (((0,), (0,)), ((), ())),
                            preferred_element_type=jnp.float32)       # (HW, HW)
        s = s + mask_ref[...].astype(jnp.float32)

        # Joint softmax over the criss-cross keys; stats land on lanes.
        m = jnp.max(s, axis=0, keepdims=True)                         # (1, HW)
        p = jnp.exp(s - m)                                            # (HW, HW)
        den = jnp.sum(p, axis=0, keepdims=True)                       # (1, HW)

        # Un-normalized value aggregation on the MXU (bf16 operands, f32 acc):
        # out_un[c, a] = sum_b v2[c, b] * p[b, a]
        out_un = jnp.dot(v2.astype(jnp.bfloat16), p.astype(jnp.bfloat16),
                         preferred_element_type=jnp.float32)          # (C, HW)

        # Deferred normalization: one per-query reciprocal, broadcast on lanes.
        inv_den = pl.reciprocal(den, approx=True)                     # (1, HW)
        o_ref[...] = (gamma_ref[0] * (out_un * inv_den) + x2d).astype(o_ref.dtype)

    out2 = pl.pallas_call(
        _cca_kernel,
        out_shape=jax.ShapeDtypeStruct((N, C, HW), x.dtype),
        grid=(N,),
        in_specs=[
            pl.BlockSpec(memory_space=pltpu.MemorySpace.SMEM),        # gamma
            pl.BlockSpec((KP, C), lambda n: (0, 0)),                  # fused W
            pl.BlockSpec((KP, 1), lambda n: (0, 0)),                  # fused b
            pl.BlockSpec((HW, HW), lambda n: (0, 0)),                 # bf16 mask
            pl.BlockSpec((None, C, HW), lambda n: (n, 0, 0)),         # x
        ],
        out_specs=pl.BlockSpec((None, C, HW), lambda n: (n, 0, 0)),
        compiler_params=pltpu.CompilerParams(
            dimension_semantics=("parallel",),
            vmem_limit_bytes=32 * 1024 * 1024),
    )(gamma1, w_all, b_all, mask_add, x2)

    return out2.reshape(N, C, H, W)


def _reference(x, wq, bq, wk, bk, wv, bv, gamma):
    """Pure-JAX reference matching the torch CrissCrossAttention forward exactly."""
    N, C, H, W = x.shape
    Cq = wq.shape[0]
    hp = lax.Precision.HIGHEST
    q = jnp.einsum('oc,nchw->nohw', wq.reshape(Cq, C), x, precision=hp) + bq[None, :, None, None]
    k = jnp.einsum('oc,nchw->nohw', wk.reshape(Cq, C), x, precision=hp) + bk[None, :, None, None]
    v = jnp.einsum('oc,nchw->nohw', wv.reshape(C, C), x, precision=hp) + bv[None, :, None, None]
    e_h = jnp.einsum('nchw,nckw->nhwk', q, k, precision=hp)     # (N,H,W,H)
    e_w = jnp.einsum('nchw,nchl->nhwl', q, k, precision=hp)     # (N,H,W,W)
    att = jax.nn.softmax(jnp.concatenate([e_h, e_w], axis=-1), axis=-1)
    att_h = att[..., :H]
    att_w = att[..., H:]
    out_h = jnp.einsum('nhwk,nckw->nchw', att_h, v, precision=hp)
    out_w = jnp.einsum('nhwl,nchl->nchw', att_w, v, precision=hp)
    return gamma.reshape(()) * (out_h + out_w) + x


if __name__ == "__main__":
    key = jax.random.PRNGKey(0)
    kx, kq, kk, kv, kbq, kbk, kbv = jax.random.split(key, 7)

    N, C, H, W = 2, 16, 16, 16
    Cq = C // 4

    x = jax.random.normal(kx, (N, C, H, W), jnp.float32)
    wq = jax.random.normal(kq, (Cq, C, 1, 1), jnp.float32) * 0.2   # query_conv weight
    wk = jax.random.normal(kk, (Cq, C, 1, 1), jnp.float32) * 0.2   # key_conv weight
    wv = jax.random.normal(kv, (C, C, 1, 1), jnp.float32) * 0.2    # value_conv weight
    bq = jax.random.normal(kbq, (Cq,), jnp.float32) * 0.1
    bk = jax.random.normal(kbk, (Cq,), jnp.float32) * 0.1
    bv = jax.random.normal(kbv, (C,), jnp.float32) * 0.1
    # nn.Parameter(torch.zeros(1)) initializes gamma to 0 (output == x); use a
    # nonzero value here so the attention path is actually exercised.
    gamma = jnp.array([0.5], jnp.float32)

    out = criss_cross_attention(x, wq, bq, wk, bk, wv, bv, gamma)
    out = jax.block_until_ready(out)

    ref = _reference(x, wq, bq, wk, bk, wv, bv, gamma)
    err = float(jnp.max(jnp.abs(out - ref)))
    assert out.shape == (N, C, H, W)
    assert jnp.allclose(out, ref, atol=2e-2, rtol=2e-2), f"max abs err {err}"

    print("KERNEL_OK")
</pallas_src>

<mosaic_0001>
module attributes {stable_mosaic.version = 11 : i64} {
  func.func @_cca_kernel(%arg0: i32, %arg1: memref<1xf32, #tpu.memory_space<smem>>, %arg2: memref<32x16xf32, #tpu.memory_space<vmem>>, %arg3: memref<32x1xf32, #tpu.memory_space<vmem>>, %arg4: memref<256x256xbf16, #tpu.memory_space<vmem>>, %arg5: memref<1x16x256xf32, #tpu.memory_space<vmem>>, %arg6: memref<1x16x256xf32, #tpu.memory_space<vmem>>) attributes {dimension_semantics = [#tpu.dimension_semantics<parallel>], iteration_bounds = array<i64: 2>, scalar_prefetch = 0 : i64, scratch_operands = 0 : i64, tpu.core_type = #tpu.core_type<tc>, window_params = [{transform_indices = @transform_0, window_bounds = array<i64: 1>}, {pipeline_mode = #tpu.pipeline_mode<synchronous>, transform_indices = @transform_1, window_bounds = array<i64: 32, 16>}, {pipeline_mode = #tpu.pipeline_mode<synchronous>, transform_indices = @transform_2, window_bounds = array<i64: 32, 1>}, {pipeline_mode = #tpu.pipeline_mode<synchronous>, transform_indices = @transform_3, window_bounds = array<i64: 256, 256>}, {transform_indices = @transform_4, window_bounds = array<i64: 1, 16, 256>}, {transform_indices = @transform_5, window_bounds = array<i64: 1, 16, 256>}]} {
    %c0 = arith.constant 0 : index
    %c0_0 = arith.constant 0 : index
    %c0_1 = arith.constant 0 : index
    %0 = vector.load %arg5[%c0, %c0_0, %c0_1] : memref<1x16x256xf32, #tpu.memory_space<vmem>>, vector<1x16x256xf32>
    %1 = vector.shape_cast %0 : vector<1x16x256xf32> to vector<16x256xf32>
    %c0_2 = arith.constant 0 : index
    %c0_3 = arith.constant 0 : index
    %2 = vector.load %arg2[%c0_2, %c0_3] : memref<32x16xf32, #tpu.memory_space<vmem>>, vector<32x16xf32>
    %cst = arith.constant dense<0.000000e+00> : vector<32x256xf32>
    %3 = tpu.matmul %2, %1, %cst {dimension_numbers = #tpu.dot_dimension_numbers<[1], [0], [0], [1], [0, 0, 1, 1], [], []>} : vector<32x16xf32>, vector<16x256xf32>, vector<32x256xf32> -> vector<32x256xf32>
    %c0_4 = arith.constant 0 : index
    %c0_5 = arith.constant 0 : index
    %4 = vector.load %arg3[%c0_4, %c0_5] : memref<32x1xf32, #tpu.memory_space<vmem>>, vector<32x1xf32>
    %5 = vector.broadcast %4 : vector<32x1xf32> to vector<32x256xf32>
    %6 = arith.addf %3, %5 : vector<32x256xf32>
    %7 = vector.extract_strided_slice %6 {offsets = [0, 0], sizes = [8, 256], strides = [1, 1]} : vector<32x256xf32> to vector<8x256xf32>
    %8 = vector.extract_strided_slice %6 {offsets = [8, 0], sizes = [8, 256], strides = [1, 1]} : vector<32x256xf32> to vector<8x256xf32>
    %9 = vector.extract_strided_slice %6 {offsets = [16, 0], sizes = [16, 256], strides = [1, 1]} : vector<32x256xf32> to vector<16x256xf32>
    %cst_6 = arith.constant dense<0.000000e+00> : vector<256x256xf32>
    %10 = tpu.matmul %8, %7, %cst_6 {dimension_numbers = #tpu.dot_dimension_numbers<[0], [0], [1], [1], [0, 1, 1, 1], [], []>} : vector<8x256xf32>, vector<8x256xf32>, vector<256x256xf32> -> vector<256x256xf32>
    %c0_7 = arith.constant 0 : index
    %c0_8 = arith.constant 0 : index
    %11 = vector.load %arg4[%c0_7, %c0_8] : memref<256x256xbf16, #tpu.memory_space<vmem>>, vector<256x256xbf16>
    %12 = arith.extf %11 : vector<256x256xbf16> to vector<256x256xf32>
    %13 = arith.addf %10, %12 : vector<256x256xf32>
    %cst_9 = arith.constant dense<0xFF800000> : vector<256xf32>
    %14 = vector.multi_reduction <maximumf>, %13, %cst_9 [0] : vector<256x256xf32> to vector<256xf32>
    %15 = vector.shape_cast %14 : vector<256xf32> to vector<1x256xf32>
    %16 = vector.broadcast %15 : vector<1x256xf32> to vector<256x256xf32>
    %17 = arith.subf %13, %16 : vector<256x256xf32>
    %18 = math.exp %17 : vector<256x256xf32>
    %cst_10 = arith.constant dense<0.000000e+00> : vector<256xf32>
    %19 = vector.multi_reduction <add>, %18, %cst_10 [0] : vector<256x256xf32> to vector<256xf32>
    %20 = vector.shape_cast %19 : vector<256xf32> to vector<1x256xf32>
    %21 = arith.truncf %9 : vector<16x256xf32> to vector<16x256xbf16>
    %22 = arith.truncf %18 : vector<256x256xf32> to vector<256x256xbf16>
    %cst_11 = arith.constant dense<0.000000e+00> : vector<16x256xf32>
    %23 = tpu.matmul %21, %22, %cst_11 {dimension_numbers = #tpu.dot_dimension_numbers<[1], [0], [0], [1], [0, 0, 1, 1], [], []>} : vector<16x256xbf16>, vector<256x256xbf16>, vector<16x256xf32> -> vector<16x256xf32>
    %24 = tpu.reciprocal %20 {approx = true} : vector<1x256xf32> -> vector<1x256xf32>
    %c0_12 = arith.constant 0 : index
    %25 = memref.load %arg1[%c0_12] : memref<1xf32, #tpu.memory_space<smem>>
    %26 = vector.broadcast %24 : vector<1x256xf32> to vector<16x256xf32>
    %27 = arith.mulf %23, %26 : vector<16x256xf32>
    %28 = vector.broadcast %25 : f32 to vector<16x256xf32>
    %29 = arith.mulf %28, %27 : vector<16x256xf32>
    %30 = arith.addf %29, %1 : vector<16x256xf32>
    %c0_13 = arith.constant 0 : index
    %c0_14 = arith.constant 0 : index
    %c0_15 = arith.constant 0 : index
    %31 = vector.load %arg6[%c0_13, %c0_14, %c0_15] : memref<1x16x256xf32, #tpu.memory_space<vmem>>, vector<1x16x256xf32>
    %32 = vector.shape_cast %31 : vector<1x16x256xf32> to vector<16x256xf32>
    %33 = vector.shape_cast %30 : vector<16x256xf32> to vector<1x16x256xf32>
    tpu.vector_store %arg6[%c0_13, %c0_14, %c0_15], %33 {strides = array<i32>} : memref<1x16x256xf32, #tpu.memory_space<vmem>>, vector<1x16x256xf32>,
    return
  }
  func.func @transform_0(%arg0: i32) -> i32 {
    %c0_i32 = arith.constant 0 : i32
    %c0_i32_0 = arith.constant 0 : i32
    return %c0_i32 : i32
  }
  func.func @transform_1(%arg0: i32) -> (i32, i32) {
    %c0_i32 = arith.constant 0 : i32
    %c0_i32_0 = arith.constant 0 : i32
    %c0_i32_1 = arith.constant 0 : i32
    return %c0_i32, %c0_i32_0 : i32, i32
  }
  func.func @transform_2(%arg0: i32) -> (i32, i32) {
    %c0_i32 = arith.constant 0 : i32
    %c0_i32_0 = arith.constant 0 : i32
    %c0_i32_1 = arith.constant 0 : i32
    return %c0_i32, %c0_i32_0 : i32, i32
  }
  func.func @transform_3(%arg0: i32) -> (i32, i32) {
    %c0_i32 = arith.constant 0 : i32
    %c0_i32_0 = arith.constant 0 : i32
    %c0_i32_1 = arith.constant 0 : i32
    return %c0_i32, %c0_i32_0 : i32, i32
  }
  func.func @transform_4(%arg0: i32) -> (i32, i32, i32) {
    %c0_i32 = arith.constant 0 : i32
    %c0_i32_0 = arith.constant 0 : i32
    %c0_i32_1 = arith.constant 0 : i32
    return %arg0, %c0_i32, %c0_i32_0 : i32, i32, i32
  }
  func.func @transform_5(%arg0: i32) -> (i32, i32, i32) {
    %c0_i32 = arith.constant 0 : i32
    %c0_i32_0 = arith.constant 0 : i32
    %c0_i32_1 = arith.constant 0 : i32
    return %arg0, %c0_i32, %c0_i32_0 : i32, i32, i32
  }
}

</mosaic_0001>

<bundles_post_ra>
// kernel: tpu_custom_call.1
= control target key start
LH: loop header
LB: loop body
LE: loop exit
PB: predicated region body
PF: predicated region fallthrough
CT: control target
= control target key end

     0   :  { %s2707_s0 = inlined_call_operand.<no memory space> [shape: f32[1], index: 0, kind: input, shape index: {}]   ;;  %s2708_s1 = inlined_call_operand.vmem [shape: f32[32,16], index: 1, kind: input, shape index: {}]   ;;  %s2709_s2 = inlined_call_operand.vmem [shape: f32[32,1], index: 2, kind: input, shape index: {}]   ;;  %s2710_s3 = inlined_call_operand.hbm [shape: bf16[256,256], index: 3, kind: input, shape index: {}]   ;;  %s2711_s4 = inlined_call_operand.vmem [shape: f32[2,16,256], index: 4, kind: input, shape index: {}]   ;;  %s2712_s5 = inlined_call_operand.hbm [shape: f32[2,16,256], index: 5, kind: output, shape index: {}]  }
   0x1   :  { %10 = sst [smem:[#allocation2]] %s2707_s0 }
   0x2   :  { %11 = vsyncpa [#allocation4], 0 }
   0x3   :  { %12 = vsyncpa [#allocation5], 0 }
   0x4   :  { %14 = vsyncpa [#allocation5 + $0x1], 0  ;;  %s1789_s20 = smov 0   ;;  %s1791_s21 = smov 0  }
   0x5   :  { %s1793_s22 = smov 0   ;;  %s1795_s23 = smov 0  }
   0x6 LB: > { %s1810_s0 = sadd.s32 4294967295, %s1748_s23   ;;  %s1367_s24 = sadd.s32 4294967294, %s1748_s23   ;;  %s1748_s23 = sphi %s1795_s23, %s2857_s23   ;;  %s1744_s22 = sphi %s1793_s22, %s2856_s22   ;;  %s1740_s21 = sphi %s1791_s21, %s2855_s21   ;;  %s1736_s20 = sphi %s1789_s20, %s2854_s20  }
   0x7   : > { %s1814_s25 = sadd.s32 1, %s1748_s23   ;;  %s137_s26 = sadd.s32 1, %s1744_s22 }
   0x8   : > { %s134_s27 = ssub.s32 %s1748_s23, %s1814_s25  ;;  %p147_p0 = scmp.ne.s32.totalorder %s1744_s22, %s1740_s21 }
   0x9   : > { %p135_p1 = scmp.eq.s32.totalorder %s134_s27, 0  ;;  %p148_p2 = scmp.eq.s32.totalorder %s1810_s0, 1 }
   0xa   : > { %p153_p3 = scmp.ne.s32.totalorder %s1740_s21, %s1736_s20  ;;  %p154_p4 = scmp.eq.s32.totalorder %s1367_s24, 1 }
   0xb   : > { %s1825_s28 = scalar_select %p135_p1, %s1744_s22, %s137_s26  }
   0xc   : > { %p1827_p5 = por %p148_p2, %p147_p0  ;;  %p1831_p6 = por %p154_p4, %p153_p3 }
   0xd   : > { %p1368_p7 = scmp.ge.s32.totalorder %s1748_s23, 1  ;;  %p161_p8 = scmp.lt.s32.totalorder %s1748_s23, 3 }
   0xe   : > { %p1471_p9 = scmp.eq.s32.totalorder %s1810_s0, 0  ;;  %s181_s8 = sshll.u32 %s2710_s3, 4  ;;  %s182_s8 = int_to_ptr.hbm [resolvable:$true] %s181_s8 }
   0xf   : > { %p162_p10 = pnand %p1368_p7, %p161_p8  ;;  %s1750_s9 = smov [#allocation3]  }
  0x10   : > { %s183_s10 = sshll.u32 %s1750_s9, 4  ;;  %s1751_s11 = smov 128   ;;  %s184_s10 = int_to_ptr.vmem [resolvable:$true] %s183_s10 }
  0x11   : > { %p1463_p11 = pneg %p162_p10  ;;  %s1752_s12 = smov 8  }
  0x12   : > { %207 = sbr.rel (%p162_p10) target bundleno = 991 (0x3df), region = 40 }
  0x13   : > { %p1464_p12 = pnand %p1471_p9, %p1463_p11 }
  0x15   : > { %1466 = dma.hbm_to_vmem [thread:$0]  (!%p1464_p12), %s182_s8, 4096, %s184_s10, [#allocation4], %s1751_s11, %s1751_s11, %s1752_s12  }
  0x17   : > { %1727 = dma.done.wait (%p1471_p9), [#allocation4], 4096  }
  0x18   : > { %1729 = vsyncadd (%p1471_p9), [#allocation4], 4294963200  ;;  %p236_p13 = scmp.lt.s32.totalorder %s1810_s0, 1  ;;  %v1753_v0 = vmov 0   ;;  %v245_v5 = vld [vmem:[%s2708_s1] sm:$0xff]  ;;  %vm273_vm0 = vcmask 130048  }
  0x19   : > { %1514 = vset.pattern.permute.xlu1 %v1753_v0  ;;  %1513 = vset.pattern.permute.xlu0 %v1753_v0  ;;  %v249_v6 = vld [vmem:[%s2709_s2] sm:$0xff]  ;;  %v250_v7 = vld [vmem:[%s2709_s2 + $0x8] sm:$0xff]  ;;  %v247_v9 = vld [vmem:[%s2708_s1 + $0x10] sm:$0xff]  ;;  %vm504_vm1 = vcmask 64512   ;;  %s1259_s18 = sld [smem:[#allocation2]]  ;;  %s233_s19 = sand.u32 1, %s1740_s21  }
  0x1a   : > { %s237_s13 = scalar_select %p236_p13, %s1810_s0, 1  ;;  %1515 = vset.pattern.permute.xlu2 %v1753_v0  ;;  %255 = vperm.xlu1 %1514, %v249_v6   ;;  %v246_v8 = vld [vmem:[%s2708_s1 + $0x8] sm:$0xff]  ;;  %v248_v10 = vld [vmem:[%s2708_s1 + $0x18] sm:$0xff]  ;;  %v251_v48 = vld [vmem:[%s2709_s2 + $0x10] sm:$0xff] }
  0x1b   : > { %260 = vperm.xlu0 %1513, %v250_v7   ;;  %265 = vperm.xlu2 %1515, %v251_v48   ;;  %v252_v50 = vld [vmem:[%s2709_s2 + $0x18] sm:$0xff]  ;;  %v346_v7 = vld [vmem:[#allocation3 + $0x10] sm:$0xff]  ;;  %s1373_s24 = sshll.u32 %s233_s19, 5  ;;  %s1454_s27 = sshll.u32 %s1810_s0, 5 }
  0x1c   : > { %s1453_s14 = sshll.u32 %s237_s13, 5  ;;  %s2664_s26 = scalar_lea.vmem [#allocation6], %s1373_s24 }
  0x1d   : > { %s1852_s17 = scalar_lea.vmem %s2711_s4, %s1453_s14  ;;  %s1289_s8 = scalar_lea.hbm %s2712_s5, %s1454_s27 }
  0x1e   : > { %v243_v1 = vld [vmem:[%s1852_s17 + $0x10] sm:$0xff]  ;;  %v244_v2 = vld [vmem:[%s1852_s17 + $0x18] sm:$0xff]  ;;  %v241_v3 = vld [vmem:[%s1852_s17] sm:$0xff]  ;;  %s1290_s9 = sshll.u32 %s2664_s26, 4  ;;  %s1292_s10 = sshll.u32 %s1289_s8, 4  ;;  %s1291_s9 = int_to_ptr.vmem [resolvable:$true] %s1290_s9  ;;  %s1293_s10 = int_to_ptr.hbm [resolvable:$true] %s1292_s10 }
  0x1f   : > { %300 = vmatpush.msra.mxu0 %v243_v1  ;;  %329 = vmatpush.msra.mxu1 %v244_v2  ;;  %v242_v4 = vld [vmem:[%s1852_s17 + $0x8] sm:$0xff]  ;;  %s1278_s0 = scalar_lea.sflag [#allocation5], %s233_s19  ;;  %s1696_s11 = sshra.s32 %s1293_s10, 4  ;;  %s1697_s11 = int_to_ptr.hbm [resolvable:$true] %s1696_s11 }
  0x20   : > { %s1698_s12 = scalar_lea.hbm %s1697_s11, 32  ;;  %s1702_s15 = scalar_lea.hbm %s2712_s5, 64 }
  0x21   : > { %301 = vmatpush.msra.mxu0 %v241_v3  ;;  %330 = vmatpush.msra.mxu1 %v242_v4  ;;  %p1699_p0 = scmp.ne.s32.totalorder %s1697_s11, %s1698_s12  ;;  %p1703_p3 = scmp.lt.s32.totalorder %s1697_s11, %s2712_s5 }
  0x22   : > { %1376 = vmatmul.msk.f32.vlgmr.msra.gmra.mxu0 %vm273_vm0, %v245_v5  ;;  %1380 = vmatmul.msk.f32.vlgmr.msra.gmra.mxu1 %vm273_vm0, %v245_v5  ;;  %p1704_p4 = scmp.lt.s32.totalorder %s1702_s15, %s1698_s12 }
  0x23   : > { %270 = vperm.xlu2 %1515, %v252_v50   ;;  %p1700_p1 = pnand %p1699_p0, %p1827_p5 }
  0x24   : > { %p1705_p7 = por %p1704_p4, %p1703_p3 }
  0x25   : > { %p1701_p2 = pneg %p1700_p1 }
  0x27   : > { %p1706_p8 = pnand %p1705_p7, %p1701_p2 }
  0x2a   : > { %1377 = vmatmul.msk.f32.gmra.mxu0 %vm273_vm0, %v246_v8  ;;  %1381 = vmatmul.msk.f32.gmra.mxu1 %vm273_vm0, %v246_v8  ;;  %v344_v8 = vld [vmem:[#allocation3] sm:$0xff] }
  0x32   : > { %1378 = vmatmul.msk.f32.gmra.mxu0 %vm273_vm0, %v247_v9  ;;  %1382 = vmatmul.msk.f32.gmra.mxu1 %vm273_vm0, %v247_v9  ;;  %v348_v9 = vld [vmem:[#allocation3 + $0x20] sm:$0xff] }
  0x3a   : > { %1379 = vmatmul.msk.f32.gmra.mxu0 %vm273_vm0, %v248_v10  ;;  %1383 = vmatmul.msk.f32.gmra.mxu1 %vm273_vm0, %v248_v10  ;;  %v380_v10 = vunpack.c.l.bf16 %v346_v7 }
  0x8c   : > { %v256_v11 = vpop.permute.xlu1 %255 }
  0x8d   : > { %v261_v16 = vpop.permute.xlu0 %260 }
  0x9f   : > { %v303_v12 = vpop.f32.mrf.mxu0  ;;  %v332_v13 = vpop.f32.mrf.mxu1 }
  0xa0   : > { %v304_v14 = vadd.f32 %v303_v12, %v256_v11  ;;  %v333_v15 = vadd.f32 %v332_v13, %v256_v11  ;;  %v381_v11 = vunpack.c.h.bf16 %v346_v7 }
  0xa2   : > { %616 = vmatpush.msrb.mxu0 %v304_v14  ;;  %1455 = vmatpush.msra.mxu2 %v304_v14  ;;  %v350_v14 = vld [vmem:[#allocation3 + $0x30] sm:$0xff] }
  0xa3   : > { %729 = vmatpush.msrb.mxu1 %v333_v15  ;;  %1456 = vmatpush.msra.mxu3 %v333_v15  ;;  %v376_v15 = vunpack.c.l.bf16 %v344_v8 }
  0xa7   : > { %v306_v17 = vpop.f32.mrf.mxu0  ;;  %v335_v18 = vpop.f32.mrf.mxu1 }
  0xa8   : > { %v307_v19 = vadd.f32 %v306_v17, %v261_v16  ;;  %v336_v20 = vadd.f32 %v335_v18, %v261_v16  ;;  %v377_v16 = vunpack.c.h.bf16 %v344_v8  ;;  %v347_v17 = vld [vmem:[#allocation3 + $0x18] sm:$0xff]  ;;  %v384_v18 = vunpack.c.l.bf16 %v348_v9 }
  0xaa   : > { %472 = vxpose.xlu1.b32.start.end [1/1] (short) %v336_v20, 128  ;;  %440 = vxpose.xlu0.b32.start.end [1/1] (short) %v307_v19, 128  ;;  %v385_v19 = vunpack.c.h.bf16 %v348_v9 }
  0xaf   : > { %v1914_v39 = vpop.f32.mrf.mxu0  ;;  %v1916_v40 = vpop.f32.mrf.mxu1 }
  0xb0   : > { %2762 = vst [vmem:[#allocation9_spill] sm:$0xff] %v1914_v39 }
  0xb1   : > { %2763 = vst [vmem:[#allocation10_spill] sm:$0xff] %v1916_v40 }
  0xb7   : > { %v1920_v43 = vpop.f32.mrf.mxu0  ;;  %v1922_v44 = vpop.f32.mrf.mxu1 }
  0xb8   : > { %2764 = vst [vmem:[#allocation11_spill] sm:$0xff] %v1920_v43 }
  0xb9   : > { %2765 = vst [vmem:[#allocation12_spill] sm:$0xff] %v1922_v44 }
 0x14e   : > { %v456_v21 = vpop.trf.xlu0  ;;  %v488_v33 = vpop.trf.xlu1 }
 0x14f   : > { %1384 = vmatmul.msk.f32.vlgmr.msrb.gmra.mxu0 %vm504_vm1, %v456_v21  ;;  %1416 = vmatmul.msk.f32.vlgmr.msrb.gmra.mxu1 %vm504_vm1, %v456_v21  ;;  %v345_v21 = vld [vmem:[#allocation3 + $0x8] sm:$0xff] }
 0x156   : > { %v457_v22 = vpop.trf.xlu0  ;;  %v489_v36 = vpop.trf.xlu1 }
 0x157   : > { %1385 = vmatmul.msk.f32.gmra.mxu0 %vm504_vm1, %v457_v22  ;;  %1417 = vmatmul.msk.f32.gmra.mxu1 %vm504_vm1, %v457_v22 }
 0x15e   : > { %v458_v23 = vpop.trf.xlu0  ;;  %v490_v38 = vpop.trf.xlu1 }
 0x15f   : > { %1386 = vmatmul.msk.f32.gmra.mxu0 %vm504_vm1, %v458_v23  ;;  %1418 = vmatmul.msk.f32.gmra.mxu1 %vm504_vm1, %v458_v23 }
 0x166   : > { %v459_v24 = vpop.trf.xlu0  ;;  %v491_v42 = vpop.trf.xlu1 }
 0x167   : > { %1387 = vmatmul.msk.f32.gmra.mxu0 %vm504_vm1, %v459_v24  ;;  %1419 = vmatmul.msk.f32.gmra.mxu1 %vm504_vm1, %v459_v24  ;;  %v388_v24 = vunpack.c.l.bf16 %v350_v14 }
 0x16e   : > { %v460_v25 = vpop.trf.xlu0  ;;  %v492_v45 = vpop.trf.xlu1 }
 0x16f   : > { %1388 = vmatmul.msk.f32.gmra.mxu0 %vm504_vm1, %v460_v25  ;;  %1420 = vmatmul.msk.f32.gmra.mxu1 %vm504_vm1, %v460_v25  ;;  %v389_v25 = vunpack.c.h.bf16 %v350_v14 }
 0x176   : > { %v461_v26 = vpop.trf.xlu0  ;;  %v493_v49 = vpop.trf.xlu1 }
 0x177   : > { %1389 = vmatmul.msk.f32.gmra.mxu0 %vm504_vm1, %v461_v26  ;;  %1421 = vmatmul.msk.f32.gmra.mxu1 %vm504_vm1, %v461_v26  ;;  %v352_v26 = vld [vmem:[#allocation3 + $0x40] sm:$0xff] }
 0x17e   : > { %v462_v27 = vpop.trf.xlu0  ;;  %v494_v53 = vpop.trf.xlu1 }
 0x17f   : > { %1390 = vmatmul.msk.f32.gmra.mxu0 %vm504_vm1, %v462_v27  ;;  %1422 = vmatmul.msk.f32.gmra.mxu1 %vm504_vm1, %v462_v27  ;;  %v382_v27 = vunpack.c.l.bf16 %v347_v17 }
 0x186   : > { %v463_v28 = vpop.trf.xlu0  ;;  %v495_v56 = vpop.trf.xlu1 }
 0x187   : > { %1391 = vmatmul.msk.f32.gmra.mxu0 %vm504_vm1, %v463_v28  ;;  %1423 = vmatmul.msk.f32.gmra.mxu1 %vm504_vm1, %v463_v28  ;;  %v383_v28 = vunpack.c.h.bf16 %v347_v17 }
 0x18e   : > { %v464_v29 = vpop.trf.xlu0  ;;  %v496_v59 = vpop.trf.xlu1 }
 0x18f   : > { %1392 = vmatmul.msk.f32.gmra.mxu0 %vm504_vm1, %v464_v29  ;;  %1424 = vmatmul.msk.f32.gmra.mxu1 %vm504_vm1, %v464_v29 }
 0x196   : > { %v465_v30 = vpop.trf.xlu0  ;;  %v497_v62 = vpop.trf.xlu1 }
 0x197   : > { %1393 = vmatmul.msk.f32.gmra.mxu0 %vm504_vm1, %v465_v30  ;;  %1425 = vmatmul.msk.f32.gmra.mxu1 %vm504_vm1, %v465_v30 }
 0x19e   : > { %v466_v31 = vpop.trf.xlu0  ;;  %v498_v1 = vpop.trf.xlu1 }
 0x19f   : > { %1394 = vmatmul.msk.f32.vlgmr.msra.gmra.mxu2 %vm504_vm1, %v466_v31  ;;  %1426 = vmatmul.msk.f32.vlgmr.msra.gmra.mxu3 %vm504_vm1, %v466_v31 }
 0x1a6   : > { %v467_v32 = vpop.trf.xlu0  ;;  %v499_v4 = vpop.trf.xlu1 }
 0x1a7   : > { %1395 = vmatmul.msk.f32.gmra.mxu2 %vm504_vm1, %v467_v32  ;;  %1427 = vmatmul.msk.f32.gmra.mxu3 %vm504_vm1, %v467_v32 }
 0x1ae   : > { %v468_v34 = vpop.trf.xlu0  ;;  %v500_v20 = vpop.trf.xlu1 }
 0x1af   : > { %1396 = vmatmul.msk.f32.gmra.mxu2 %vm504_vm1, %v468_v34  ;;  %1428 = vmatmul.msk.f32.gmra.mxu3 %vm504_vm1, %v468_v34 }
 0x1b6   : > { %v469_v35 = vpop.trf.xlu0  ;;  %v501_v17 = vpop.trf.xlu1 }
 0x1b7   : > { %1397 = vmatmul.msk.f32.gmra.mxu2 %vm504_vm1, %v469_v35  ;;  %1429 = vmatmul.msk.f32.gmra.mxu3 %vm504_vm1, %v469_v35  ;;  %v349_v35 = vld [vmem:[#allocation3 + $0x28] sm:$0xff] }
 0x1be   : > { %v470_v37 = vpop.trf.xlu0 }
 0x1bf   : > { %1398 = vmatmul.msk.f32.gmra.mxu2 %vm504_vm1, %v470_v37  ;;  %1430 = vmatmul.msk.f32.gmra.mxu3 %vm504_vm1, %v470_v37  ;;  %v378_v37 = vunpack.c.l.bf16 %v345_v21 }
 0x1c6   : > { %v471_v41 = vpop.trf.xlu0 }
 0x1c7   : > { %1399 = vmatmul.msk.f32.gmra.mxu2 %vm504_vm1, %v471_v41  ;;  %1431 = vmatmul.msk.f32.gmra.mxu3 %vm504_vm1, %v471_v41  ;;  %v392_v41 = vunpack.c.l.bf16 %v352_v26 }
 0x1cc   : > { %v1926_v46 = vpop.f32.mrf.mxu0  ;;  %v1928_v47 = vpop.f32.mrf.mxu1 }
 0x1cd   : > { %v1979_v31 = vadd.f32 %v1926_v46, %v376_v15  ;;  %v1982_v32 = vadd.f32 %v1928_v47, %v377_v16 }
 0x1cf   : > { %1400 = vmatmul.msk.f32.gmra.mxu2 %vm504_vm1, %v488_v33  ;;  %1432 = vmatmul.msk.f32.gmra.mxu3 %vm504_vm1, %v488_v33  ;;  %2767 = vst [vmem:[#allocation14_spill] sm:$0xff] %v1982_v32 }
 0x1d4   : > { %v1940_v51 = vpop.f32.mrf.mxu0  ;;  %v1942_v52 = vpop.f32.mrf.mxu1 }
 0x1d7   : > { %1401 = vmatmul.msk.f32.gmra.mxu2 %vm504_vm1, %v489_v36  ;;  %1433 = vmatmul.msk.f32.gmra.mxu3 %vm504_vm1, %v489_v36  ;;  %v354_v36 = vld [vmem:[#allocation3 + $0x50] sm:$0xff] }
 0x1dc   : > { %v624_v54 = vpop.f32.mrf.mxu0  ;;  %v737_v55 = vpop.f32.mrf.mxu1 }
 0x1dd   : > { %v1972_v22 = vadd.f32 %v624_v54, %v380_v10  ;;  %v1974_v23 = vadd.f32 %v737_v55, %v381_v11  ;;  %v387_v54 = vunpack.c.h.bf16 %v349_v35  ;;  %v351_v55 = vld [vmem:[#allocation3 + $0x38] sm:$0xff]  ;;  %v353_v11 = vld [vmem:[#allocation3 + $0x48] sm:$0xff] }
 0x1de   : > { %v390_v9 = vunpack.c.l.bf16 %v351_v55  ;;  %v391_v10 = vunpack.c.h.bf16 %v351_v55 }
 0x1df   : > { %1402 = vmatmul.msk.f32.gmra.mxu2 %vm504_vm1, %v490_v38  ;;  %1434 = vmatmul.msk.f32.gmra.mxu3 %vm504_vm1, %v490_v38  ;;  %2766 = vst [vmem:[#allocation13_spill] sm:$0xff] %v1974_v23  ;;  %v379_v38 = vunpack.c.h.bf16 %v345_v21  ;;  %v864_v46 = vmax.f32 %v1982_v32, %v1974_v23  ;;  %v373_v32 = vld [vmem:[#allocation3 + $0xe8] sm:$0xff] }
 0x1e4   : > { %v1948_v57 = vpop.f32.mrf.mxu0  ;;  %v1950_v58 = vpop.f32.mrf.mxu1 }
 0x1e7   : > { %1403 = vmatmul.msk.f32.gmra.mxu2 %vm504_vm1, %v491_v42  ;;  %1435 = vmatmul.msk.f32.gmra.mxu3 %vm504_vm1, %v491_v42  ;;  %v393_v42 = vunpack.c.h.bf16 %v352_v26  ;;  %v395_v26 = vunpack.c.h.bf16 %v353_v11 }
 0x1ec   : > { %v630_v60 = vpop.f32.mrf.mxu0  ;;  %v743_v61 = vpop.f32.mrf.mxu1 }
 0x1ed   : > { %v1984_v33 = vadd.f32 %v630_v60, %v384_v18  ;;  %v1986_v34 = vadd.f32 %v743_v61, %v385_v19  ;;  %v1997_v60 = vadd.f32 %v1948_v57, %v382_v27  ;;  %v2000_v61 = vadd.f32 %v1950_v58, %v383_v28 }
 0x1ef   : > { %1404 = vmatmul.msk.f32.gmra.mxu2 %vm504_vm1, %v492_v45  ;;  %1436 = vmatmul.msk.f32.gmra.mxu3 %vm504_vm1, %v492_v45  ;;  %2768 = vst [vmem:[#allocation15_spill] sm:$0xff] %v1986_v34  ;;  %v827_v45 = vmax.f32 %v1979_v31, %v1972_v22 }
 0x1f0   : > { %2771 = vst [vmem:[#allocation18_spill] sm:$0xff] %v2000_v61 }
 0x1f4   : > { %v1958_v63 = vpop.f32.mrf.mxu0  ;;  %v1960_v0 = vpop.f32.mrf.mxu1 }
 0x1f7   : > { %1405 = vmatmul.msk.f32.gmra.mxu2 %vm504_vm1, %v493_v49  ;;  %1437 = vmatmul.msk.f32.gmra.mxu3 %vm504_vm1, %v493_v49 }
 0x1fc   : > { %v636_v2 = vpop.f32.mrf.mxu0  ;;  %v749_v3 = vpop.f32.mrf.mxu1 }
 0x1fd   : > { %v1992_v48 = vadd.f32 %v636_v2, %v388_v24  ;;  %v1994_v47 = vadd.f32 %v749_v3, %v389_v25  ;;  %v356_v2 = vld [vmem:[#allocation3 + $0x60] sm:$0xff]  ;;  %v2005_v3 = vadd.f32 %v1940_v51, %v378_v37  ;;  %v355_v51 = vld [vmem:[#allocation3 + $0x58] sm:$0xff] }
 0x1fe   : > { %v401_v16 = vunpack.c.h.bf16 %v356_v2 }
 0x1ff   : > { %1406 = vmatmul.msk.f32.gmra.mxu2 %vm504_vm1, %v494_v53  ;;  %1438 = vmatmul.msk.f32.gmra.mxu3 %vm504_vm1, %v494_v53  ;;  %2769 = vst [vmem:[#allocation16_spill] sm:$0xff] %v1992_v48  ;;  %v386_v53 = vunpack.c.l.bf16 %v349_v35  ;;  %v828_v18 = vmax.f32 %v2005_v3, %v1997_v60 }
 0x200   : > { %2770 = vst [vmem:[#allocation17_spill] sm:$0xff] %v1994_v47 }
 0x201   : > { %v2027_v21 = vadd.f32 %v1958_v63, %v386_v53  ;;  %v399_v63 = vunpack.c.h.bf16 %v355_v51 }
 0x203   : > { %2776 = vst [vmem:[#allocation23_spill] sm:$0xff] %v2027_v21 }
 0x204   : > { %v1966_v5 = vpop.f32.mrf.mxu0  ;;  %v1968_v6 = vpop.f32.mrf.mxu1 }
 0x205   : > { %v2035_v28 = vadd.f32 %v1966_v5, %v390_v9  ;;  %v502_v9 = vpop.trf.xlu1 }
 0x207   : > { %1407 = vmatmul.msk.f32.gmra.mxu2 %vm504_vm1, %v495_v56  ;;  %1439 = vmatmul.msk.f32.gmra.mxu3 %vm504_vm1, %v495_v56  ;;  %v396_v56 = vunpack.c.l.bf16 %v354_v36  ;;  %2778 = vst [vmem:[#allocation25_spill] sm:$0xff] %v2035_v28 }
 0x20c   : > { %v642_v29 = vpop.f32.mrf.mxu0  ;;  %v755_v30 = vpop.f32.mrf.mxu1 }
 0x20d   : > { %v2010_v7 = vadd.f32 %v642_v29, %v392_v41  ;;  %v2012_v8 = vadd.f32 %v755_v30, %v393_v42  ;;  %v2038_v29 = vadd.f32 %v1968_v6, %v391_v10  ;;  %v398_v30 = vunpack.c.l.bf16 %v355_v51 }
 0x20e   : > { %v830_v42 = vmax.f32 %v828_v18, %v2027_v21 }
 0x20f   : > { %1408 = vmatmul.msk.f32.gmra.mxu2 %vm504_vm1, %v496_v59  ;;  %1440 = vmatmul.msk.f32.gmra.mxu3 %vm504_vm1, %v496_v59  ;;  %v397_v59 = vunpack.c.h.bf16 %v354_v36  ;;  %2773 = vst [vmem:[#allocation20_spill] sm:$0xff] %v2010_v7 }
 0x210   : > { %2774 = vst [vmem:[#allocation21_spill] sm:$0xff] %v2012_v8  ;;  %v832_v55 = vmax.f32 %v830_v42, %v2035_v28 }
 0x211   : > { %2779 = vst [vmem:[#allocation26_spill] sm:$0xff] %v2038_v29 }
 0x214   : > { %v645_v25 = vpop.f32.mrf.mxu0  ;;  %v758_v27 = vpop.f32.mrf.mxu1 }
 0x215   : > { %v2050_v6 = vadd.f32 %v758_v27, %v395_v26  ;;  %v503_v27 = vpop.trf.xlu1 }
 0x217   : > { %1409 = vmatmul.msk.f32.gmra.mxu2 %vm504_vm1, %v497_v62  ;;  %1441 = vmatmul.msk.f32.gmra.mxu3 %vm504_vm1, %v497_v62  ;;  %v829_v62 = vmax.f32 %v827_v45, %v1984_v33  ;;  %v357_v45 = vld [vmem:[#allocation3 + $0x68] sm:$0xff]  ;;  %2782 = vst [vmem:[#allocation29_spill] sm:$0xff] %v2050_v6 }
 0x219   : > { %v831_v57 = vmax.f32 %v829_v62, %v1992_v48 }
 0x21f   : > { %1410 = vmatmul.msk.f32.gmra.mxu2 %vm504_vm1, %v498_v1  ;;  %1442 = vmatmul.msk.f32.gmra.mxu3 %vm504_vm1, %v498_v1  ;;  %v866_v1 = vmax.f32 %v864_v46, %v1986_v34 }
 0x221   : > { %v868_v58 = vmax.f32 %v866_v1, %v1994_v47  ;;  %v402_v1 = vunpack.c.l.bf16 %v357_v45 }
 0x222   : > { %v648_v12 = vpop.f32.mrf.mxu2  ;;  %v761_v13 = vpop.f32.mrf.mxu3 }
 0x223   : > { %v2016_v14 = vadd.f32 %v648_v12, %v396_v56  ;;  %v2018_v15 = vadd.f32 %v761_v13, %v397_v59  ;;  %v2030_v12 = vadd.f32 %v1960_v0, %v387_v54  ;;  %v833_v13 = vmax.f32 %v831_v57, %v2010_v7 }
 0x224   : > { %v870_v24 = vmax.f32 %v868_v58, %v2012_v8 }
 0x225   : > { %2775 = vst [vmem:[#allocation22_spill] sm:$0xff] %v2018_v15  ;;  %v835_v0 = vmax.f32 %v833_v13, %v2016_v14 }
 0x226   : > { %2777 = vst [vmem:[#allocation24_spill] sm:$0xff] %v2030_v12  ;;  %v872_v37 = vmax.f32 %v870_v24, %v2018_v15 }
 0x227   : > { %1411 = vmatmul.msk.f32.gmra.mxu2 %vm504_vm1, %v499_v4  ;;  %1443 = vmatmul.msk.f32.gmra.mxu3 %vm504_vm1, %v499_v4  ;;  %v2008_v4 = vadd.f32 %v1942_v52, %v379_v38  ;;  %v400_v52 = vunpack.c.l.bf16 %v356_v2  ;;  %v403_v2 = vunpack.c.h.bf16 %v357_v45 }
 0x229   : > { %2772 = vst [vmem:[#allocation19_spill] sm:$0xff] %v2008_v4  ;;  %v865_v19 = vmax.f32 %v2008_v4, %v2000_v61  ;;  %v371_v61 = vld [vmem:[#allocation3 + $0xd8] sm:$0xff]  ;;  %v372_v4 = vld [vmem:[#allocation3 + $0xe0] sm:$0xff] }
 0x22a   : > { %v651_v49 = vpop.f32.mrf.mxu2  ;;  %v764_v50 = vpop.f32.mrf.mxu3 }
 0x22b   : > { %v867_v5 = vmax.f32 %v865_v19, %v2030_v12  ;;  %v2056_v59 = vadd.f32 %v651_v49, %v398_v30  ;;  %v2058_v62 = vadd.f32 %v764_v50, %v399_v63  ;;  %v359_v30 = vld [vmem:[#allocation3 + $0x78] sm:$0xff] }
 0x22d   : > { %v869_v56 = vmax.f32 %v867_v5, %v2038_v29  ;;  %2783 = vst [vmem:[#allocation30_spill] sm:$0xff] %v2058_v62  ;;  %v368_v29 = vld [vmem:[#allocation3 + $0xc0] sm:$0xff] }
 0x22e   : > { %v424_v34 = vunpack.c.l.bf16 %v368_v29 }
 0x22f   : > { %1412 = vmatmul.msk.f32.gmra.mxu2 %vm504_vm1, %v500_v20  ;;  %1444 = vmatmul.msk.f32.gmra.mxu3 %vm504_vm1, %v500_v20  ;;  %v394_v20 = vunpack.c.l.bf16 %v353_v11  ;;  %v871_v58 = vmax.f32 %v869_v56, %v2050_v6 }
 0x231   : > { %v2048_v46 = vadd.f32 %v645_v25, %v394_v20  ;;  %v873_v49 = vmax.f32 %v871_v58, %v2058_v62  ;;  %v425_v62 = vunpack.c.h.bf16 %v368_v29 }
 0x232   : > { %v654_v35 = vpop.f32.mrf.mxu2  ;;  %v767_v36 = vpop.f32.mrf.mxu3 }
 0x233   : > { %v2042_v38 = vadd.f32 %v654_v35, %v400_v52  ;;  %v2044_v41 = vadd.f32 %v767_v36, %v401_v16  ;;  %2781 = vst [vmem:[#allocation28_spill] sm:$0xff] %v2048_v46  ;;  %v834_v57 = vmax.f32 %v832_v55, %v2048_v46  ;;  %v358_v16 = vld [vmem:[#allocation3 + $0x70] sm:$0xff]  ;;  %v406_v36 = vunpack.c.l.bf16 %v359_v30  ;;  %v360_v55 = vld [vmem:[#allocation3 + $0x80] sm:$0xff]  ;;  %v375_v46 = vld [vmem:[#allocation3 + $0xf8] sm:$0xff] }
 0x234   : > { %v404_v19 = vunpack.c.l.bf16 %v358_v16  ;;  %v405_v13 = vunpack.c.h.bf16 %v358_v16 }
 0x235   : > { %2780 = vst [vmem:[#allocation27_spill] sm:$0xff] %v2044_v41  ;;  %v837_v53 = vmax.f32 %v835_v0, %v2042_v38  ;;  %v874_v54 = vmax.f32 %v872_v37, %v2044_v41  ;;  %v836_v51 = vmax.f32 %v834_v57, %v2056_v59  ;;  %v407_v0 = vunpack.c.h.bf16 %v359_v30 }
 0x236   : > { %v434_v41 = vunpack.c.l.bf16 %v373_v32 }
 0x237   : > { %1413 = vmatmul.msk.f32.gmra.mxu2 %vm504_vm1, %v501_v17  ;;  %1445 = vmatmul.msk.f32.gmra.mxu3 %vm504_vm1, %v501_v17 }
 0x23a   : > { %v657_v10 = vpop.f32.mrf.mxu2  ;;  %v770_v11 = vpop.f32.mrf.mxu3 }
 0x23b   : > { %v2066_v52 = vadd.f32 %v657_v10, %v402_v1  ;;  %v2068_v50 = vadd.f32 %v770_v11, %v403_v2  ;;  %v409_v2 = vunpack.c.h.bf16 %v360_v55  ;;  %v361_v10 = vld [vmem:[#allocation3 + $0x88] sm:$0xff] }
 0x23c   : > { %v411_v16 = vunpack.c.h.bf16 %v361_v10 }
 0x23d   : > { %2784 = vst [vmem:[#allocation31_spill] sm:$0xff] %v2068_v50  ;;  %v838_v17 = vmax.f32 %v836_v51, %v2066_v52  ;;  %v875_v18 = vmax.f32 %v873_v49, %v2068_v50  ;;  %v410_v49 = vunpack.c.l.bf16 %v361_v10  ;;  %v432_v50 = vunpack.c.l.bf16 %v372_v4 }
 0x23f   : > { %1414 = vmatmul.msk.f32.gmra.mxu2 %vm504_vm1, %v502_v9  ;;  %1446 = vmatmul.msk.f32.gmra.mxu3 %vm504_vm1, %v502_v9 }
 0x242   : > { %v660_v24 = vpop.f32.mrf.mxu2  ;;  %v773_v20 = vpop.f32.mrf.mxu3 }
 0x243   : > { %v2074_v25 = vadd.f32 %v660_v24, %v404_v19  ;;  %v2076_v26 = vadd.f32 %v773_v20, %v405_v13  ;;  %v362_v24 = vld [vmem:[#allocation3 + $0x90] sm:$0xff] }
 0x244   : > { %v412_v30 = vunpack.c.l.bf16 %v362_v24 }
 0x245   : > { %2785 = vst [vmem:[#allocation32_spill] sm:$0xff] %v2076_v26  ;;  %v839_v63 = vmax.f32 %v837_v53, %v2074_v25  ;;  %v876_v35 = vmax.f32 %v874_v54, %v2076_v26  ;;  %v408_v53 = vunpack.c.l.bf16 %v360_v55 }
 0x247   : > { %1415 = vmatmul.msk.f32.gmra.mxu2 %vm504_vm1, %v503_v27  ;;  %1447 = vmatmul.msk.f32.gmra.mxu3 %vm504_vm1, %v503_v27 }
 0x24a   : > { %v663_v37 = vpop.f32.mrf.mxu2  ;;  %v776_v42 = vpop.f32.mrf.mxu3 }
 0x24b   : > { %v2082_v5 = vadd.f32 %v663_v37, %v406_v36  ;;  %v2084_v45 = vadd.f32 %v776_v42, %v407_v0  ;;  %v413_v36 = vunpack.c.h.bf16 %v362_v24  ;;  %v363_v42 = vld [vmem:[#allocation3 + $0x98] sm:$0xff] }
 0x24d   : > { %2786 = vst [vmem:[#allocation33_spill] sm:$0xff] %v2084_v45  ;;  %v840_v56 = vmax.f32 %v838_v17, %v2082_v5  ;;  %v877_v1 = vmax.f32 %v875_v18, %v2084_v45 }
 0x252   : > { %v666_v54 = vpop.f32.mrf.mxu2  ;;  %v779_v57 = vpop.f32.mrf.mxu3 }
 0x253   : > { %v2088_v58 = vadd.f32 %v666_v54, %v408_v53  ;;  %v2090_v9 = vadd.f32 %v779_v57, %v409_v2  ;;  %v414_v2 = vunpack.c.l.bf16 %v363_v42  ;;  %v415_v54 = vunpack.c.h.bf16 %v363_v42 }
 0x255   : > { %2787 = vst [vmem:[#allocation34_spill] sm:$0xff] %v2090_v9  ;;  %v841_v11 = vmax.f32 %v839_v63, %v2088_v58  ;;  %v878_v51 = vmax.f32 %v876_v35, %v2090_v9  ;;  %v374_v9 = vld [vmem:[#allocation3 + $0xf0] sm:$0xff] }
 0x25a   : > { %v669_v19 = vpop.f32.mrf.mxu2  ;;  %v782_v13 = vpop.f32.mrf.mxu3 }
 0x25b   : > { %v2094_v17 = vadd.f32 %v669_v19, %v410_v49  ;;  %v2096_v18 = vadd.f32 %v782_v13, %v411_v16  ;;  %v364_v49 = vld [vmem:[#allocation3 + $0xa0] sm:$0xff] }
 0x25c   : > { %v416_v13 = vunpack.c.l.bf16 %v364_v49  ;;  %v417_v24 = vunpack.c.h.bf16 %v364_v49  ;;  %v366_v49 = vld [vmem:[#allocation3 + $0xb0] sm:$0xff] }
 0x25d   : > { %2788 = vst [vmem:[#allocation35_spill] sm:$0xff] %v2096_v18  ;;  %v842_v20 = vmax.f32 %v840_v56, %v2094_v17  ;;  %v879_v27 = vmax.f32 %v877_v1, %v2096_v18 }
 0x262   : > { %v672_v0 = vpop.f32.mrf.mxu2  ;;  %v785_v37 = vpop.f32.mrf.mxu3 }
 0x263   : > { %v2100_v63 = vadd.f32 %v672_v0, %v412_v30  ;;  %v2102_v35 = vadd.f32 %v785_v37, %v413_v36  ;;  %v365_v0 = vld [vmem:[#allocation3 + $0xa8] sm:$0xff] }
 0x265   : > { %2789 = vst [vmem:[#allocation36_spill] sm:$0xff] %v2102_v35  ;;  %v843_v55 = vmax.f32 %v841_v11, %v2100_v63  ;;  %v880_v53 = vmax.f32 %v878_v51, %v2102_v35 }
 0x26a   : > { %v675_v57 = vpop.f32.mrf.mxu2  ;;  %v788_v10 = vpop.f32.mrf.mxu3 }
 0x26b   : > { %v2106_v56 = vadd.f32 %v675_v57, %v414_v2  ;;  %v2108_v1 = vadd.f32 %v788_v10, %v415_v54  ;;  %v418_v2 = vunpack.c.l.bf16 %v365_v0  ;;  %v419_v54 = vunpack.c.h.bf16 %v365_v0 }
 0x26d   : > { %2790 = vst [vmem:[#allocation37_spill] sm:$0xff] %v2108_v1  ;;  %v844_v16 = vmax.f32 %v842_v20, %v2106_v56  ;;  %v881_v19 = vmax.f32 %v879_v27, %v2108_v1  ;;  %v430_v1 = vunpack.c.l.bf16 %v371_v61 }
 0x272   : > { %v678_v30 = vpop.f32.mrf.mxu2  ;;  %v791_v36 = vpop.f32.mrf.mxu3 }
 0x273   : > { %v2112_v11 = vadd.f32 %v678_v30, %v416_v13  ;;  %v2114_v51 = vadd.f32 %v791_v36, %v417_v24  ;;  %v420_v30 = vunpack.c.l.bf16 %v366_v49 }
 0x275   : > { %2791 = vst [vmem:[#allocation38_spill] sm:$0xff] %v2114_v51  ;;  %v2117_v37 = vmax.f32 %v843_v55, %v2112_v11  ;;  %v2120_v42 = vmax.f32 %v880_v53, %v2114_v51  ;;  %v421_v55 = vunpack.c.h.bf16 %v366_v49 }
 0x27a   : > { %v681_v20 = vpop.f32.mrf.mxu2  ;;  %v794_v57 = vpop.f32.mrf.mxu3 }
 0x27b   : > { %v2122_v27 = vadd.f32 %v681_v20, %v418_v2  ;;  %v2124_v10 = vadd.f32 %v794_v57, %v419_v54  ;;  %v370_v2 = vld [vmem:[#allocation3 + $0xd0] sm:$0xff] }
 0x27c   : > { %v428_v51 = vunpack.c.l.bf16 %v370_v2 }
 0x27d   : > { %2792 = vst [vmem:[#allocation39_spill] sm:$0xff] %v2124_v10  ;;  %v846_v13 = vmax.f32 %v844_v16, %v2122_v27  ;;  %v2128_v24 = vmax.f32 %v881_v19, %v2124_v10 }
 0x282   : > { %v684_v36 = vpop.f32.mrf.mxu2  ;;  %v797_v44 = vpop.f32.mrf.mxu3 }
 0x283   : > { %v2130_v53 = vadd.f32 %v684_v36, %v420_v30  ;;  %v2132_v40 = vadd.f32 %v797_v44, %v421_v55  ;;  %v367_v44 = vld [vmem:[#allocation3 + $0xb8] sm:$0xff] }
 0x284   : > { %v422_v12 = vunpack.c.l.bf16 %v367_v44  ;;  %v423_v35 = vunpack.c.h.bf16 %v367_v44 }
 0x285   : > { %v847_v0 = vmax.f32 %v2117_v37, %v2130_v53  ;;  %v369_v37 = vld [vmem:[#allocation3 + $0xc8] sm:$0xff] }
 0x286   : > { %v426_v23 = vunpack.c.l.bf16 %v369_v37  ;;  %v427_v15 = vunpack.c.h.bf16 %v369_v37  ;;  %v438_v37 = vunpack.c.l.bf16 %v375_v46 }
 0x28a   : > { %v687_v54 = vpop.f32.mrf.mxu2  ;;  %v800_v20 = vpop.f32.mrf.mxu3 }
 0x28b   : > { %v2138_v10 = vadd.f32 %v687_v54, %v422_v12  ;;  %v436_v54 = vunpack.c.l.bf16 %v374_v9  ;;  %v2149_v44 = vadd.f32 %v800_v20, %v423_v35 }
 0x28d   : > { %v848_v7 = vmax.f32 %v846_v13, %v2138_v10 }
 0x292   : > { %v690_v16 = vpop.f32.mrf.mxu2  ;;  %v803_v57 = vpop.f32.mrf.mxu3 }
 0x293   : > { %v2140_v18 = vadd.f32 %v690_v16, %v424_v34  ;;  %v429_v16 = vunpack.c.h.bf16 %v370_v2  ;;  %v2157_v13 = vadd.f32 %v803_v57, %v425_v62 }
 0x295   : > { %v849_v34 = vmax.f32 %v847_v0, %v2140_v18  ;;  %2793 = vst [vmem:[#allocation40_spill] sm:$0xff] %v2157_v13 }
 0x29a   : > { %v693_v19 = vpop.f32.mrf.mxu2  ;;  %v806_v43 = vpop.f32.mrf.mxu3 }
 0x29b   : > { %v2142_v26 = vadd.f32 %v693_v19, %v426_v23  ;;  %v431_v23 = vunpack.c.h.bf16 %v371_v61  ;;  %v885_v61 = vmax.f32 %v2128_v24, %v2149_v44 }
 0x29d   : > { %v850_v19 = vmax.f32 %v848_v7, %v2142_v26 }
 0x2a2   : > { %v696_v39 = vpop.f32.mrf.mxu2  ;;  %v809_v49 = vpop.f32.mrf.mxu3 }
 0x2a3   : > { %v2145_v28 = vadd.f32 %v696_v39, %v428_v51  ;;  %v2159_v39 = vadd.f32 %v806_v43, %v427_v15  ;;  %v2167_v7 = vadd.f32 %v809_v49, %v429_v16  ;;  %v2797_v15 = vmax.f32 %v2120_v42, %v2132_v40 }
 0x2a5   : > { %2794 = vst [vmem:[#allocation41_spill] sm:$0xff] %v2159_v39  ;;  %v851_v35 = vmax.f32 %v849_v34, %v2145_v28  ;;  %v887_v2 = vmax.f32 %v885_v61, %v2159_v39 }
 0x2a6   : > { %2795 = vst [vmem:[#allocation42_spill] sm:$0xff] %v2167_v7 }
 0x2aa   : > { %v699_v6 = vpop.f32.mrf.mxu2  ;;  %v812_v8 = vpop.f32.mrf.mxu3 }
 0x2ab   : > { %v2147_v12 = vadd.f32 %v699_v6, %v430_v1  ;;  %v433_v6 = vunpack.c.h.bf16 %v372_v4  ;;  %v435_v1 = vunpack.c.h.bf16 %v373_v32 }
 0x2ad   : > { %v852_v51 = vmax.f32 %v850_v19, %v2147_v12 }
 0x2b2   : > { %v702_v30 = vpop.f32.mrf.mxu2  ;;  %v815_v36 = vpop.f32.mrf.mxu3 }
 0x2b3   : > { %v2153_v21 = vadd.f32 %v702_v30, %v432_v50  ;;  %v437_v50 = vunpack.c.h.bf16 %v374_v9  ;;  %v2180_v24 = vadd.f32 %v815_v36, %v433_v6 }
 0x2b5   : > { %v853_v43 = vmax.f32 %v851_v35, %v2153_v21 }
 0x2ba   : > { %v705_v55 = vpop.f32.mrf.mxu2  ;;  %v818_v47 = vpop.f32.mrf.mxu3 }
 0x2bb   : > { %v2155_v29 = vadd.f32 %v705_v55, %v434_v41  ;;  %v2169_v41 = vadd.f32 %v812_v8, %v431_v23  ;;  %v2182_v20 = vadd.f32 %v818_v47, %v435_v1  ;;  %v439_v55 = vunpack.c.h.bf16 %v375_v46 }
 0x2bd   : > { %2796 = vst [vmem:[#allocation43_spill] sm:$0xff] %v2169_v41  ;;  %v854_v4 = vmax.f32 %v852_v51, %v2155_v29  ;;  %v889_v49 = vmax.f32 %v887_v2, %v2169_v41 }
 0x2bf   : > { %v891_v36 = vmax.f32 %v889_v49, %v2182_v20  ;;  %v2799_v49 = vld [vmem:[#allocation16_spill] sm:$0xff] }
 0x2c2   : > { %v708_v45 = vpop.f32.mrf.mxu2  ;;  %v821_v48 = vpop.f32.mrf.mxu3 }
 0x2c3   : > { %v2163_v0 = vadd.f32 %v708_v45, %v436_v54  ;;  %v886_v45 = vmax.f32 %v2797_v15, %v2157_v13  ;;  %v2188_v30 = vadd.f32 %v821_v48, %v437_v50 }
 0x2c5   : > { %v855_v8 = vmax.f32 %v853_v43, %v2163_v0  ;;  %v888_v57 = vmax.f32 %v886_v45, %v2167_v7 }
 0x2c7   : > { %v890_v34 = vmax.f32 %v888_v57, %v2180_v24 }
 0x2c9   : > { %v892_v23 = vmax.f32 %v890_v34, %v2188_v30  ;;  %v2800_v34 = vld [vmem:[#allocation25_spill] sm:$0xff] }
 0x2ca   : > { %v711_v62 = vpop.f32.mrf.mxu2  ;;  %v824_v42 = vpop.f32.mrf.mxu3 }
 0x2cb   : > { %v2173_v32 = vadd.f32 %v711_v62, %v438_v37  ;;  %v2192_v16 = vadd.f32 %v824_v42, %v439_v55 }
 0x2cd   : > { %v856_v9 = vmax.f32 %v854_v4, %v2173_v32  ;;  %v893_v19 = vmax.f32 %v891_v36, %v2192_v16 }
 0x2cf   : > { %v857_v54 = vmax.f32 %v855_v8, %v856_v9  ;;  %v894_v6 = vmax.f32 %v892_v23, %v893_v19  ;;  %v2798_v8 = vld [vmem:[#allocation23_spill] sm:$0xff]  ;;  %v2801_v23 = vld [vmem:[#allocation20_spill] sm:$0xff] }
 0x2d1   : > { %v858_v47 = vrot.slane %v857_v54, 4  ;;  %v895_v61 = vrot.slane %v894_v6, 4 }
 0x2d3   : > { %v859_v37 = vmax.f32 %v857_v54, %v858_v47  ;;  %v896_v57 = vmax.f32 %v894_v6, %v895_v61 }
 0x2d5   : > { %v860_v1 = vrot.slane %v859_v37, 2 }
 0x2d7   : > { %v861_v35 = vmax.f32 %v859_v37, %v860_v1 }
 0x2d9   : > { %v862_v48 = vrot.slane %v861_v35, 1 }
 0x2db   : > { %v2196_v51 = vmax.f32 %v861_v35, %v862_v48  ;;  %v897_v35 = vrot.slane %v896_v57, 2 }
 0x2dd   : > { %v901_v46 = vsub.f32 %v1979_v31, %v2196_v51  ;;  %v903_v50 = vsub.f32 %v2005_v3, %v2196_v51  ;;  %v905_v62 = vsub.f32 %v1972_v22, %v2196_v51  ;;  %v921_v43 = vsub.f32 %v2016_v14, %v2196_v51 }
 0x2de   : > { %v923_v4 = vsub.f32 %v2056_v59, %v2196_v51  ;;  %v925_v15 = vsub.f32 %v2042_v38, %v2196_v51  ;;  %v927_v45 = vsub.f32 %v2066_v52, %v2196_v51  ;;  %v929_v31 = vsub.f32 %v2074_v25, %v2196_v51 }
 0x2df   : > { %v931_v3 = vsub.f32 %v2082_v5, %v2196_v51  ;;  %v933_v22 = vsub.f32 %v2088_v58, %v2196_v51  ;;  %v935_v14 = vsub.f32 %v2094_v17, %v2196_v51  ;;  %v937_v59 = vsub.f32 %v2100_v63, %v2196_v51 }
 0x2e0   : > { %v939_v38 = vsub.f32 %v2106_v56, %v2196_v51  ;;  %v907_v52 = vsub.f32 %v1997_v60, %v2196_v51  ;;  %v941_v25 = vsub.f32 %v2112_v11, %v2196_v51  ;;  %v943_v5 = vsub.f32 %v2122_v27, %v2196_v51  ;;  %v2808_v27 = vld [vmem:[#allocation30_spill] sm:$0xff] }
 0x2e1   : > { %v945_v58 = vsub.f32 %v2130_v53, %v2196_v51  ;;  %v909_v2 = vsub.f32 %v1984_v33, %v2196_v51  ;;  %v911_v9 = vsub.f32 %v2798_v8, %v2196_v51  ;;  %v913_v55 = vsub.f32 %v2799_v49, %v2196_v51  ;;  %v2802_v33 = vld [vmem:[#allocation28_spill] sm:$0xff]  ;;  %v2809_v53 = vld [vmem:[#allocation27_spill] sm:$0xff] }
 0x2e2   : > { %v965_v60 = vmul.f32 1.442695, %v901_v46  ;;  %v969_v54 = vmul.f32 1.442695, %v903_v50  ;;  %v973_v42 = vmul.f32 1.442695, %v905_v62  ;;  %v915_v36 = vsub.f32 %v2800_v34, %v2196_v51 }
 0x2e3   : > { %v977_v47 = vmul.f32 1.442695, %v907_v52  ;;  %v917_v19 = vsub.f32 %v2801_v23, %v2196_v51  ;;  %v981_v37 = vmul.f32 1.442695, %v909_v2  ;;  %v919_v1 = vsub.f32 %v2802_v33, %v2196_v51 }
 0x2e4   : > { %1516 = vpow2.f32 %v965_v60  ;;  %v985_v6 = vmul.f32 1.442695, %v911_v9  ;;  %v989_v48 = vmul.f32 1.442695, %v913_v55  ;;  %v993_v46 = vmul.f32 1.442695, %v915_v36 }
 0x2e5   : > { %1518 = vpow2.f32 %v969_v54  ;;  %v997_v61 = vmul.f32 1.442695, %v917_v19  ;;  %v1001_v50 = vmul.f32 1.442695, %v919_v1  ;;  %v898_v62 = vmax.f32 %v896_v57, %v897_v35 }
 0x2e6   : > { %1520 = vpow2.f32 %v973_v42  ;;  %v1005_v8 = vmul.f32 1.442695, %v921_v43  ;;  %v947_v49 = vsub.f32 %v2138_v10, %v2196_v51  ;;  %v1009_v9 = vmul.f32 1.442695, %v923_v4 }
 0x2e7   : > { %1522 = vpow2.f32 %v977_v47  ;;  %v949_v55 = vsub.f32 %v2140_v18, %v2196_v51  ;;  %v1013_v54 = vmul.f32 1.442695, %v925_v15  ;;  %v951_v43 = vsub.f32 %v2142_v26, %v2196_v51 }
 0x2e8   : > { %1524 = vpow2.f32 %v981_v37  ;;  %v1017_v34 = vmul.f32 1.442695, %v927_v45  ;;  %v899_v10 = vrot.slane %v898_v62, 1  ;;  %v953_v4 = vsub.f32 %v2145_v28, %v2196_v51 }
 0x2e9   : > { %1526 = vpow2.f32 %v985_v6  ;;  %v1021_v18 = vmul.f32 1.442695, %v929_v31  ;;  %v955_v23 = vsub.f32 %v2147_v12, %v2196_v51  ;;  %v957_v26 = vsub.f32 %v2153_v21, %v2196_v51 }
 0x2ea   : > { %v2244_v52 = vpop.eup %1516  ;;  %1528 = vpow2.f32 %v989_v48  ;;  %v1025_v45 = vmul.f32 1.442695, %v931_v3  ;;  %v959_v37 = vsub.f32 %v2155_v29, %v2196_v51  ;;  %v1029_v28 = vmul.f32 1.442695, %v933_v22 }
 0x2eb   : > { %2803 = vst [vmem:[#allocation23_spill] sm:$0xff] %v2244_v52  ;;  %v2246_v2 = vpop.eup %1518  ;;  %1530 = vpow2.f32 %v993_v46  ;;  %v1033_v12 = vmul.f32 1.442695, %v935_v14  ;;  %v1037_v3 = vmul.f32 1.442695, %v937_v59  ;;  %v2284_v1 = vmax.f32 %v898_v62, %v899_v10  ;;  %v2813_v10 = vld [vmem:[#allocation34_spill] sm:$0xff] }
 0x2ec   : > { %2804 = vst [vmem:[#allocation16_spill] sm:$0xff] %v2246_v2  ;;  %v2250_v60 = vpop.eup %1520  ;;  %1532 = vpow2.f32 %v997_v61  ;;  %v1093_v57 = vadd.f32 %v2246_v2, %v2244_v52  ;;  %v1041_v22 = vmul.f32 1.442695, %v939_v38  ;;  %v1045_v35 = vmul.f32 1.442695, %v941_v25  ;;  %v2807_v61 = vld [vmem:[#allocation22_spill] sm:$0xff] }
 0x2ed   : > { %2805 = vst [vmem:[#allocation25_spill] sm:$0xff] %v2250_v60  ;;  %v2256_v42 = vpop.eup %1522  ;;  %1534 = vpow2.f32 %v1001_v50  ;;  %v1049_v63 = vmul.f32 1.442695, %v943_v5  ;;  %v1053_v59 = vmul.f32 1.442695, %v945_v58  ;;  %v2822_v50 = vld [vmem:[#allocation18_spill] sm:$0xff] }
 0x2ee   : > { %2806 = vst [vmem:[#allocation20_spill] sm:$0xff] %v2256_v42  ;;  %v2260_v36 = vpop.eup %1524  ;;  %1536 = vpow2.f32 %v1005_v8  ;;  %v1094_v15 = vadd.f32 %v2250_v60, %v1093_v57  ;;  %v1057_v48 = vmul.f32 1.442695, %v947_v49  ;;  %v1061_v38 = vmul.f32 1.442695, %v949_v55  ;;  %v2810_v49 = vld [vmem:[#allocation31_spill] sm:$0xff] }
 0x2ef   : > { %v2265_v47 = vpop.eup %1526  ;;  %1538 = vpow2.f32 %v1009_v9  ;;  %v1065_v11 = vmul.f32 1.442695, %v951_v43  ;;  %v2811_v55 = vld [vmem:[#allocation32_spill] sm:$0xff]  ;;  %v2812_v43 = vld [vmem:[#allocation33_spill] sm:$0xff]  ;;  %v908_v29 = vsub.f32 %v2822_v50, %v2284_v1 }
 0x2f0   : > { %v2271_v19 = vpop.eup %1528  ;;  %1540 = vpow2.f32 %v1013_v54  ;;  %v1095_v31 = vadd.f32 %v2256_v42, %v1094_v15  ;;  %v2814_v15 = vld [vmem:[#allocation35_spill] sm:$0xff] }
 0x2f1   : > { %v2276_v33 = vpop.eup %1530  ;;  %1542 = vpow2.f32 %v1017_v34  ;;  %v2817_v34 = vld [vmem:[#allocation38_spill] sm:$0xff]  ;;  %v2818_v54 = vld [vmem:[#allocation39_spill] sm:$0xff] }
 0x2f2   : > { %v2286_v6 = vpop.eup %1532  ;;  %1544 = vpow2.f32 %v1021_v18  ;;  %v1096_v17 = vadd.f32 %v2260_v36, %v1095_v31  ;;  %v1073_v18 = vmul.f32 1.442695, %v955_v23  ;;  %v2820_v23 = vld [vmem:[#allocation19_spill] sm:$0xff] }
 0x2f3   : > { %v2295_v14 = vpop.eup %1534  ;;  %1546 = vpow2.f32 %v1025_v45 }
 0x2f4   : > { %v2303_v56 = vpop.eup %1536  ;;  %1548 = vpow2.f32 %v1029_v28  ;;  %v1097_v25 = vadd.f32 %v2265_v47, %v1096_v17  ;;  %v2816_v17 = vld [vmem:[#allocation37_spill] sm:$0xff] }
 0x2f5   : > { %v2306_v46 = vpop.eup %1538  ;;  %1550 = vpow2.f32 %v1033_v12  ;;  %v2815_v12 = vld [vmem:[#allocation36_spill] sm:$0xff] }
 0x2f6   : > { %v2314_v62 = vpop.eup %1540  ;;  %1552 = vpow2.f32 %v1037_v3  ;;  %v1098_v8 = vadd.f32 %v2271_v19, %v1097_v25  ;;  %v1069_v3 = vmul.f32 1.442695, %v953_v4  ;;  %v2819_v4 = vld [vmem:[#allocation14_spill] sm:$0xff] }
 0x2f7   : > { %v2321_v57 = vpop.eup %1542  ;;  %1554 = vpow2.f32 %v1041_v22 }
 0x2f8   : > { %v2329_v28 = vpop.eup %1544  ;;  %1556 = vpow2.f32 %v1045_v35  ;;  %v1099_v31 = vadd.f32 %v2276_v33, %v1098_v8  ;;  %v961_v8 = vsub.f32 %v2163_v0, %v2196_v51  ;;  %v1077_v35 = vmul.f32 1.442695, %v957_v26 }
 0x2f9   : > { %v2336_v25 = vpop.eup %1546  ;;  %1558 = vpow2.f32 %v1049_v63  ;;  %v963_v63 = vsub.f32 %v2173_v32, %v2196_v51  ;;  %v1081_v32 = vmul.f32 1.442695, %v959_v37 }
 0x2fa   : > { %v2344_v9 = vpop.eup %1548  ;;  %1560 = vpow2.f32 %v1053_v59  ;;  %v1100_v22 = vadd.f32 %v2286_v6, %v1099_v31  ;;  %v902_v59 = vsub.f32 %v2819_v4, %v2284_v1  ;;  %v1085_v21 = vmul.f32 1.442695, %v961_v8 }
 0x2fb   : > { %v2349_v58 = vpop.eup %1550  ;;  %1562 = vpow2.f32 %v1057_v48  ;;  %v904_v48 = vsub.f32 %v2820_v23, %v2284_v1 }
 0x2fc   : > { %v2353_v45 = vpop.eup %1552  ;;  %1564 = vpow2.f32 %v1061_v38  ;;  %v1101_v0 = vadd.f32 %v2295_v14, %v1100_v22  ;;  %v2821_v22 = vld [vmem:[#allocation13_spill] sm:$0xff]  ;;  %v967_v23 = vmul.f32 1.442695, %v902_v59  ;;  %v2826_v59 = vld [vmem:[#allocation26_spill] sm:$0xff] }
 0x2fd   : > { %v2361_v31 = vpop.eup %1554  ;;  %1566 = vpow2.f32 %v1065_v11  ;;  %v906_v5 = vsub.f32 %v2821_v22, %v2284_v1  ;;  %v1089_v11 = vmul.f32 1.442695, %v963_v63  ;;  %v2824_v22 = vld [vmem:[#allocation24_spill] sm:$0xff] }
 0x2fe   : > { %v2368_v38 = vpop.eup %1556  ;;  %1568 = vpow2.f32 %v1069_v3  ;;  %v1102_v26 = vadd.f32 %v2303_v56, %v1101_v0  ;;  %v2823_v3 = vld [vmem:[#allocation15_spill] sm:$0xff]  ;;  %v912_v2 = vsub.f32 %v2824_v22, %v2284_v1  ;;  %v2827_v22 = vld [vmem:[#allocation21_spill] sm:$0xff] }
 0x2ff   : > { %v2373_v4 = vpop.eup %1558  ;;  %1570 = vpow2.f32 %v1073_v18  ;;  %v910_v8 = vsub.f32 %v2823_v3, %v2284_v1  ;;  %v971_v18 = vmul.f32 1.442695, %v904_v48  ;;  %v916_v3 = vsub.f32 %v2826_v59, %v2284_v1 }
 0x300   : > { %v2377_v51 = vpop.eup %1560  ;;  %1572 = vpow2.f32 %v1077_v35  ;;  %v1103_v37 = vadd.f32 %v2306_v46, %v1102_v26  ;;  %v2825_v35 = vld [vmem:[#allocation17_spill] sm:$0xff]  ;;  %v975_v26 = vmul.f32 1.442695, %v906_v5 }
 0x301   : > { %v2382_v0 = vpop.eup %1562  ;;  %1574 = vpow2.f32 %v1081_v32  ;;  %v914_v52 = vsub.f32 %v2825_v35, %v2284_v1  ;;  %v979_v32 = vmul.f32 1.442695, %v908_v29  ;;  %v2828_v5 = vld [vmem:[#allocation29_spill] sm:$0xff] }
 0x302   : > { %v2386_v63 = vpop.eup %1564  ;;  %1576 = vpow2.f32 %v1085_v21  ;;  %v1104_v50 = vadd.f32 %v2314_v62, %v1103_v37  ;;  %v918_v21 = vsub.f32 %v2827_v22, %v2284_v1  ;;  %v983_v37 = vmul.f32 1.442695, %v910_v8 }
 0x303   : > { %v2391_v39 = vpop.eup %1566  ;;  %1578 = vpow2.f32 %v1089_v11  ;;  %v920_v35 = vsub.f32 %v2828_v5, %v2284_v1  ;;  %v987_v11 = vmul.f32 1.442695, %v912_v2  ;;  %v991_v59 = vmul.f32 1.442695, %v914_v52 }
 0x304   : > { %v2395_v13 = vpop.eup %1568  ;;  %v1105_v48 = vadd.f32 %v2321_v57, %v1104_v50  ;;  %1580 = vpow2.f32 %v967_v23  ;;  %v995_v50 = vmul.f32 1.442695, %v916_v3  ;;  %v999_v23 = vmul.f32 1.442695, %v918_v21 }
 0x305   : > { %v2400_v42 = vpop.eup %1570  ;;  %1582 = vpow2.f32 %v971_v18  ;;  %v1003_v2 = vmul.f32 1.442695, %v920_v35  ;;  %v2829_v18 = vsub.f32 %v2807_v61, %v2284_v1  ;;  %v2830_v3 = vsub.f32 %v2808_v27, %v2284_v1 }
 0x306   : > { %v2404_v60 = vpop.eup %1572  ;;  %v1106_v29 = vadd.f32 %v2329_v28, %v1105_v48  ;;  %1584 = vpow2.f32 %v975_v26  ;;  %v1183_v21 = vpack.c.bf16 %v2336_v25, %v2329_v28  ;;  %v2831_v5 = vsub.f32 %v2809_v53, %v2284_v1 }
 0x307   : > { %v2407_v41 = vpop.eup %1574  ;;  %1586 = vpow2.f32 %v979_v32  ;;  %v1007_v48 = vmul.f32 1.442695, %v2829_v18  ;;  %v1011_v32 = vmul.f32 1.442695, %v2830_v3 }
 0x308   : > { %v2409_v22 = vpop.eup %1576  ;;  %v1107_v8 = vadd.f32 %v2336_v25, %v1106_v29  ;;  %1588 = vpow2.f32 %v983_v37  ;;  %v1015_v61 = vmul.f32 1.442695, %v2831_v5  ;;  %1201 = vmatpush.bf16.msra.mxu0 %v1183_v21  ;;  %v1179_v25 = vpack.c.bf16 %v2306_v46, %v2303_v56 }
 0x309   : > { %v2412_v7 = vpop.eup %1578  ;;  %1590 = vpow2.f32 %v987_v11  ;;  %v1181_v11 = vpack.c.bf16 %v2321_v57, %v2314_v62  ;;  %v2833_v62 = vsub.f32 %v2811_v55, %v2284_v1  ;;  %v2834_v56 = vsub.f32 %v2812_v43, %v2284_v1 }
 0x30a   : > { %v2417_v26 = vpop.eup %1580  ;;  %v1108_v52 = vadd.f32 %v2344_v9, %v1107_v8  ;;  %1592 = vpow2.f32 %v991_v59  ;;  %v1199_v35 = vpack.c.bf16 %v2412_v7, %v2409_v22  ;;  %v2832_v59 = vsub.f32 %v2810_v49, %v2284_v1 }
 0x30b   : > { %v2425_v37 = vpop.eup %1582  ;;  %1594 = vpow2.f32 %v995_v50  ;;  %v1023_v57 = vmul.f32 1.442695, %v2833_v62  ;;  %v1027_v46 = vmul.f32 1.442695, %v2834_v56  ;;  %v1197_v49 = vpack.c.bf16 %v2407_v41, %v2404_v60 }
 0x30c   : > { %v2434_v29 = vpop.eup %1584  ;;  %v1109_v27 = vadd.f32 %v2349_v58, %v1108_v52  ;;  %1596 = vpow2.f32 %v999_v23  ;;  %v1130_v28 = vadd.f32 %v2425_v37, %v2417_v26  ;;  %v1019_v50 = vmul.f32 1.442695, %v2832_v59  ;;  %1215 = vmatpush.bf16.msra.mxu1 %v1199_v35  ;;  %1202 = vmatpush.bf16.msra.mxu0 %v1181_v11 }
 0x30d   : > { %v2441_v53 = vpop.eup %1586  ;;  %1598 = vpow2.f32 %v1003_v2  ;;  %v1191_v55 = vpack.c.bf16 %v2382_v0, %v2377_v51  ;;  %v1189_v52 = vpack.c.bf16 %v2373_v4, %v2368_v38  ;;  %v2835_v43 = vsub.f32 %v2813_v10, %v2284_v1 }
 0x30e   : > { %v2449_v8 = vpop.eup %1588  ;;  %v1110_v23 = vadd.f32 %v2353_v45, %v1109_v27  ;;  %1600 = vpow2.f32 %v1007_v48  ;;  %v1131_v2 = vadd.f32 %v2434_v29, %v1130_v28  ;;  %v2836_v35 = vsub.f32 %v2814_v15, %v2284_v1 }
 0x30f   : > { %v2456_v18 = vpop.eup %1590  ;;  %1602 = vpow2.f32 %v1011_v32  ;;  %v1031_v21 = vmul.f32 1.442695, %v2835_v43  ;;  %v1187_v28 = vpack.c.bf16 %v2361_v31, %v2353_v45  ;;  %v2837_v11 = vsub.f32 %v2815_v12, %v2284_v1 }
 0x310   : > { %v2464_v3 = vpop.eup %1592  ;;  %v1111_v48 = vadd.f32 %v2361_v31, %v1110_v23  ;;  %1604 = vpow2.f32 %v1015_v61  ;;  %v1132_v32 = vadd.f32 %v2441_v53, %v1131_v2  ;;  %v1035_v27 = vmul.f32 1.442695, %v2836_v35  ;;  %1216 = vmatpush.bf16.msra.mxu1 %v1197_v49  ;;  %1203 = vmatpush.bf16.msra.mxu0 %v1179_v25 }
 0x311   : > { %v2471_v5 = vpop.eup %1594  ;;  %1606 = vpow2.f32 %v1019_v50  ;;  %v1185_v61 = vpack.c.bf16 %v2349_v58, %v2344_v9  ;;  %v1039_v50 = vmul.f32 1.442695, %v2837_v11  ;;  %v948_v23 = vsub.f32 %v2149_v44, %v2284_v1 }
 0x312   : > { %v2480_v59 = vpop.eup %1596  ;;  %v1112_v10 = vadd.f32 %v2368_v38, %v1111_v48  ;;  %1608 = vpow2.f32 %v1023_v57  ;;  %v1133_v62 = vadd.f32 %v2449_v8, %v1132_v32  ;;  %v2838_v56 = vsub.f32 %v2816_v17, %v2284_v1 }
 0x313   : > { %v2487_v15 = vpop.eup %1598  ;;  %1610 = vpow2.f32 %v1027_v46  ;;  %v1195_v49 = vpack.c.bf16 %v2400_v42, %v2395_v13  ;;  %v2839_v48 = vsub.f32 %v2817_v34, %v2284_v1  ;;  %v2840_v17 = vsub.f32 %v2818_v54, %v2284_v1 }
 0x314   : > { %v1043_v2 = vmul.f32 1.442695, %v2838_v56  ;;  %v2496_v57 = vpop.eup %1600  ;;  %v1113_v12 = vadd.f32 %v2373_v4, %v1112_v10  ;;  %1612 = vpow2.f32 %v1031_v21  ;;  %v1134_v32 = vadd.f32 %v2456_v18, %v1133_v62 }
 0x315   : > { %v1047_v43 = vmul.f32 1.442695, %v2839_v48  ;;  %v2503_v44 = vpop.eup %1602  ;;  %1614 = vpow2.f32 %v1035_v27  ;;  %v1051_v46 = vmul.f32 1.442695, %v2840_v17  ;;  %v2841_v35 = vsub.f32 %v2132_v40, %v2284_v1  ;;  %1217 = vmatpush.bf16.msra.mxu1 %v1195_v49 }
 0x316   : > { %v1177_v21 = vpack.c.bf16 %v2295_v14, %v2286_v6  ;;  %v2513_v34 = vpop.eup %1604  ;;  %v1114_v10 = vadd.f32 %v2377_v51, %v1113_v12  ;;  %1616 = vpow2.f32 %v1039_v50  ;;  %v1135_v25 = vadd.f32 %v2464_v3, %v1134_v32  ;;  %v2525_v6 = vpop.permute.xlu2 %265 }
 0x317   : > { %v1055_v11 = vmul.f32 1.442695, %v2841_v35  ;;  %v1180_v27 = vpack.c.bf16 %v2503_v44, %v2496_v57  ;;  %v2519_v54 = vpop.eup %1606  ;;  %1618 = vpow2.f32 %v1043_v2  ;;  %v1059_v62 = vmul.f32 1.442695, %v948_v23 }
 0x318   : > { %v1193_v40 = vpack.c.bf16 %v2391_v39, %v2386_v63  ;;  %v2523_v56 = vpop.eup %1608  ;;  %v1115_v14 = vadd.f32 %v2382_v0, %v1114_v10  ;;  %1620 = vpow2.f32 %v1047_v43  ;;  %v1136_v50 = vadd.f32 %v2471_v5, %v1135_v25  ;;  %1204 = vmatpush.bf16.msra.mxu0 %v1177_v21 }
 0x319   : > { %v1182_v49 = vpack.c.bf16 %v2519_v54, %v2513_v34  ;;  %v2531_v12 = vpop.eup %1610  ;;  %v962_v23 = vsub.f32 %v2188_v30, %v2284_v1  ;;  %1622 = vpow2.f32 %v1051_v46  ;;  %v1175_v2 = vpack.c.bf16 %v2276_v33, %v2271_v19 }
 0x31a   : > { %1218 = vmatpush.bf16.msra.mxu1 %v1193_v40  ;;  %v2537_v48 = vpop.eup %1612  ;;  %v1116_v43 = vadd.f32 %v2386_v63, %v1115_v14  ;;  %1624 = vpow2.f32 %v1055_v11  ;;  %v1137_v32 = vadd.f32 %v2480_v59, %v1136_v50  ;;  %v1184_v17 = vpack.c.bf16 %v2531_v12, %v2523_v56 }
 0x31b   : > { %v2543_v35 = vpop.eup %1614  ;;  %v964_v30 = vsub.f32 %v2192_v16, %v2284_v1  ;;  %1626 = vpow2.f32 %v1059_v62  ;;  %v958_v33 = vsub.f32 %v2180_v24, %v2284_v1  ;;  %v960_v10 = vsub.f32 %v2182_v20, %v2284_v1  ;;  %v2842_v20 = vld [vmem:[#allocation42_spill] sm:$0xff] }
 0x31c   : > { %v2547_v46 = vpop.eup %1616  ;;  %v1117_v19 = vadd.f32 %v2391_v39, %v1116_v43  ;;  %v1138_v63 = vadd.f32 %v2487_v15, %v1137_v32  ;;  %1205 = vmatpush.bf16.msra.mxu0 %v1175_v2  ;;  %v1186_v11 = vpack.c.bf16 %v2543_v35, %v2537_v48  ;;  %v1087_v16 = vmul.f32 1.442695, %v962_v23  ;;  %v2843_v2 = vld [vmem:[#allocation43_spill] sm:$0xff] }
 0x31d   : > { %v2555_v21 = vpop.eup %1618  ;;  %v1173_v62 = vpack.c.bf16 %v2265_v47, %v2260_v36  ;;  %v954_v50 = vsub.f32 %v2842_v20, %v2284_v1  ;;  %v1091_v23 = vmul.f32 1.442695, %v964_v30  ;;  %v956_v43 = vsub.f32 %v2843_v2, %v2284_v1  ;;  %v2844_v30 = vld [vmem:[#allocation25_spill] sm:$0xff] }
 0x31e   : > { %1219 = vmatpush.bf16.msra.mxu1 %v1191_v55  ;;  %v2562_v39 = vpop.eup %1620  ;;  %v1118_v24 = vadd.f32 %v2395_v13, %v1117_v19  ;;  %v1139_v25 = vadd.f32 %v2496_v57, %v1138_v63  ;;  %v1188_v40 = vpack.c.bf16 %v2555_v21, %v2547_v46  ;;  %v1079_v55 = vmul.f32 1.442695, %v958_v33  ;;  %v2845_v19 = vld [vmem:[#allocation20_spill] sm:$0xff]  ;;  %v271_v33 = vpop.permute.xlu2 %270 }
 0x31f   : > { %v2570_v14 = vpop.eup %1622  ;;  %v1083_v32 = vmul.f32 1.442695, %v960_v10  ;;  %1628 = vpow2.f32 %v1087_v16  ;;  %v2847_v10 = vld [vmem:[#allocation40_spill] sm:$0xff]  ;;  %v1071_v4 = vmul.f32 1.442695, %v954_v50  ;;  %v2850_v50 = vld [vmem:[#allocation23_spill] sm:$0xff] }
 0x320   : > { %v2574_v51 = vpop.eup %1624  ;;  %v1119_v0 = vadd.f32 %v2400_v42, %v1118_v24  ;;  %v1140_v13 = vadd.f32 %v2503_v44, %v1139_v25  ;;  %1206 = vmatpush.bf16.msra.mxu0 %v1173_v62  ;;  %v1190_v36 = vpack.c.bf16 %v2570_v14, %v2562_v39  ;;  %v1171_v42 = vpack.c.bf16 %v2845_v19, %v2844_v30  ;;  %v2846_v62 = vld [vmem:[#allocation9_spill] sm:$0xff] }
 0x321   : > { %v2580_v47 = vpop.eup %1626  ;;  %v310_v20 = vadd.f32 %v2846_v62, %v2525_v6  ;;  %v950_v2 = vsub.f32 %v2847_v10, %v2284_v1  ;;  %1630 = vpow2.f32 %v1091_v23  ;;  %v1075_v30 = vmul.f32 1.442695, %v956_v43 }
 0x322   : > { %1220 = vmatpush.bf16.msra.mxu1 %v1189_v52  ;;  %v1120_v63 = vadd.f32 %v2404_v60, %v1119_v0  ;;  %v1141_v24 = vadd.f32 %v2513_v34, %v1140_v13  ;;  %v1192_v25 = vpack.c.bf16 %v2580_v47, %v2574_v51  ;;  %1632 = vpow2.f32 %v1079_v55  ;;  %v2848_v60 = vld [vmem:[#allocation11_spill] sm:$0xff]  ;;  %v2849_v0 = vld [vmem:[#allocation41_spill] sm:$0xff]  ;;  %v2851_v55 = vld [vmem:[#allocation16_spill] sm:$0xff] }
 0x323   : > { %v313_v16 = vadd.f32 %v2848_v60, %v271_v33  ;;  %v952_v13 = vsub.f32 %v2849_v0, %v2284_v1  ;;  %1634 = vpow2.f32 %v1083_v32  ;;  %v1169_v19 = vpack.c.bf16 %v2851_v55, %v2850_v50 }
 0x324   : > { %v1121_v38 = vadd.f32 %v2407_v41, %v1120_v63  ;;  %v1142_v52 = vadd.f32 %v2519_v54, %v1141_v24  ;;  %1207 = vmatpush.bf16.msra.mxu0 %v1171_v42  ;;  %v2852_v42 = vld [vmem:[#allocation10_spill] sm:$0xff]  ;;  %v2853_v24 = vld [vmem:[#allocation12_spill] sm:$0xff]  ;;  %v1063_v43 = vmul.f32 1.442695, %v950_v2  ;;  %1636 = vpow2.f32 %v1071_v4 }
 0x325   : > { %v339_v63 = vadd.f32 %v2852_v42, %v2525_v6  ;;  %v342_v62 = vadd.f32 %v2853_v24, %v271_v33  ;;  %v1629_v10 = vpop.eup %1628  ;;  %1638 = vpow2.f32 %v1075_v30  ;;  %v1178_v34 = vpack.c.bf16 %v2487_v15, %v2480_v59 }
 0x326   : > { %1221 = vmatpush.bf16.msra.mxu1 %v1187_v28  ;;  %v1122_v23 = vadd.f32 %v2409_v22, %v1121_v38  ;;  %v1143_v41 = vadd.f32 %v2523_v56, %v1142_v52  ;;  %v1167_v22 = vpack.c.bf16 %v313_v16, %v310_v20  ;;  %v1067_v28 = vmul.f32 1.442695, %v952_v13 }
 0x327   : > { %v1631_v31 = vpop.eup %1630  ;;  %v1168_v2 = vpack.c.bf16 %v342_v62, %v339_v63  ;;  %1640 = vpow2.f32 %v1063_v43  ;;  %v1176_v16 = vpack.c.bf16 %v2471_v5, %v2464_v3  ;;  %v1172_v15 = vpack.c.bf16 %v2441_v53, %v2434_v29  ;;  %v1649_v62 = vld [vmem:[%s1852_s17 + $0x10] sm:$0xff] }
 0x328   : > { %v2613_v1 = vadd.f32 %v2412_v7, %v1122_v23  ;;  %v1144_v45 = vadd.f32 %v2531_v12, %v1143_v41  ;;  %1208 = vmatpush.bf16.msra.mxu0 %v1169_v19  ;;  %v1633_v6 = vpop.eup %1632  ;;  %v1200_v32 = vpack.c.bf16 %v1631_v31, %v1629_v10  ;;  %1642 = vpow2.f32 %v1067_v28  ;;  %v1648_v23 = vld [vmem:[%s1852_s17] sm:$0xff] }
 0x329   : > { %v1635_v33 = vpop.eup %1634 }
 0x32a   : > { %1222 = vmatpush.bf16.msra.mxu1 %v1185_v61  ;;  %v1145_v7 = vadd.f32 %v2537_v48, %v1144_v45  ;;  %v1637_v58 = vpop.eup %1636  ;;  %v1198_v61 = vpack.c.bf16 %v1635_v33, %v1633_v6  ;;  %v1124_v29 = vrot.slane %v2613_v1, 4 }
 0x32b   : > { %1209 = vmatmul.bf16.vlgmr.msra.gmra.mxu0 %v1167_v22  ;;  %v1639_v56 = vpop.eup %1638 }
 0x32c   : > { %1229 = vmatpush.bf16.msrb.mxu0 %v1184_v17  ;;  %v1146_v20 = vadd.f32 %v2543_v35, %v1145_v7  ;;  %v1196_v4 = vpack.c.bf16 %v1639_v56, %v1637_v58 }
 0x32d   : > { %1223 = vmatmul.bf16.vlgmr.msra.gmra.mxu1 %v1168_v2  ;;  %v1641_v17 = vpop.eup %1640 }
 0x32e   : > { %1243 = vmatpush.bf16.msrb.mxu1 %v1200_v32  ;;  %v1147_v9 = vadd.f32 %v2547_v46, %v1146_v20  ;;  %v1643_v52 = vpop.eup %1642 }
 0x32f   : > { %v1194_v60 = vpack.c.bf16 %v1643_v52, %v1641_v17 }
 0x330   : > { %1230 = vmatpush.bf16.msrb.mxu0 %v1182_v49  ;;  %v1148_v12 = vadd.f32 %v2555_v21, %v1147_v9 }
 0x332   : > { %1244 = vmatpush.bf16.msrb.mxu1 %v1198_v61  ;;  %v1149_v38 = vadd.f32 %v2562_v39, %v1148_v12 }
 0x334   : > { %1231 = vmatpush.bf16.msrb.mxu0 %v1180_v27  ;;  %v1150_v54 = vadd.f32 %v2570_v14, %v1149_v38  ;;  %v1174_v27 = vpack.c.bf16 %v2456_v18, %v2449_v8  ;;  %v1170_v8 = vpack.c.bf16 %v2425_v37, %v2417_v26  ;;  %v1125_v26 = vadd.f32 %v1124_v29, %v2613_v1 }
 0x336   : > { %1245 = vmatpush.bf16.msrb.mxu1 %v1196_v4  ;;  %v1151_v49 = vadd.f32 %v2574_v51, %v1150_v54  ;;  %v1126_v37 = vrot.slane %v1125_v26, 2 }
 0x338   : > { %1232 = vmatpush.bf16.msrb.mxu0 %v1178_v34  ;;  %v1152_v57 = vadd.f32 %v2580_v47, %v1151_v49  ;;  %v1127_v53 = vadd.f32 %v1126_v37, %v1125_v26 }
 0x33a   : > { %1246 = vmatpush.bf16.msrb.mxu1 %v1194_v60  ;;  %v1153_v44 = vadd.f32 %v1641_v17, %v1152_v57  ;;  %v1128_v39 = vrot.slane %v1127_v53, 1 }
 0x33c   : > { %1233 = vmatpush.bf16.msrb.mxu0 %v1176_v16  ;;  %v1154_v0 = vadd.f32 %v1643_v52, %v1153_v44  ;;  %v1129_v46 = vadd.f32 %v1128_v39, %v1127_v53 }
 0x33e   : > { %1247 = vmatpush.bf16.msrb.mxu1 %v1192_v25  ;;  %v1155_v59 = vadd.f32 %v1637_v58, %v1154_v0  ;;  %1644 = vrcp.f32 %v1129_v46 }
 0x340   : > { %1234 = vmatpush.bf16.msrb.mxu0 %v1174_v27  ;;  %v1156_v13 = vadd.f32 %v1639_v56, %v1155_v59  ;;  %v1651_v56 = vld [vmem:[%s1852_s17 + $0x18] sm:$0xff] }
 0x342   : > { %1248 = vmatpush.bf16.msrb.mxu1 %v1190_v36  ;;  %v1157_v3 = vadd.f32 %v1633_v6, %v1156_v13 }
 0x344   : > { %1235 = vmatpush.bf16.msrb.mxu0 %v1172_v15  ;;  %v1158_v18 = vadd.f32 %v1635_v33, %v1157_v3  ;;  %v1645_v48 = vpop.eup %1644  ;;  %v1650_v33 = vld [vmem:[%s1852_s17 + $0x8] sm:$0xff] }
 0x346   : > { %1249 = vmatpush.bf16.msrb.mxu1 %v1188_v40  ;;  %v1159_v5 = vadd.f32 %v1629_v10, %v1158_v18 }
 0x348   : > { %1236 = vmatpush.bf16.msrb.mxu0 %v1170_v8  ;;  %v1160_v51 = vadd.f32 %v1631_v31, %v1159_v5 }
 0x34a   : > { %1250 = vmatpush.bf16.msrb.mxu1 %v1186_v11  ;;  %v1161_v35 = vrot.slane %v1160_v51, 4  ;;  %v1264_v11 = vstv %s1259_s18 }
 0x34b   : > { %1237 = vmatmul.bf16.vlgmr.msrb.gmra.mxu0 %v1167_v22 }
 0x34c   : > { %v1162_v25 = vadd.f32 %v1161_v35, %v1160_v51 }
 0x34d   : > { %1251 = vmatmul.bf16.vlgmr.msrb.gmra.mxu1 %v1168_v2 }
 0x34e   : > { %v1163_v19 = vrot.slane %v1162_v25, 2 }
 0x350   : > { %v1164_v24 = vadd.f32 %v1163_v19, %v1162_v25 }
 0x352   : > { %v1165_v1 = vrot.slane %v1164_v24, 1 }
 0x354   : > { %v1166_v43 = vadd.f32 %v1165_v1, %v1164_v24 }
 0x356   : > { %1646 = vrcp.f32 %v1166_v43 }
 0x35c   : > { %v1647_v28 = vpop.eup %1646 }
 0x3a8   : > { %v1210_v21 = vpop.f32.mrf.mxu0 }
 0x3aa   : > { %v1224_v40 = vpop.f32.mrf.mxu1 }
 0x3ab   : > { %v1225_v14 = vadd.f32 %v1224_v40, %v1210_v21 }
 0x3ad   : > { %v1260_v36 = vmul.f32 %v1645_v48, %v1225_v14 }
 0x3af   : > { %v1265_v47 = vmul.f32 %v1264_v11, %v1260_v36 }
 0x3b0   : > { %v1212_v30 = vpop.f32.mrf.mxu0 }
 0x3b1   : > { %v1269_v41 = vadd.f32 %v1648_v23, %v1265_v47 }
 0x3b2   : > { %v1226_v50 = vpop.f32.mrf.mxu1 }
 0x3b3   : > { %1273 = vst [vmem:[%s2664_s26] sm:$0xff] %v1269_v41  ;;  %v1227_v55 = vadd.f32 %v1226_v50, %v1212_v30 }
 0x3b5   : > { %v1262_v42 = vmul.f32 %v1645_v48, %v1227_v55 }
 0x3b7   : > { %v1267_v63 = vmul.f32 %v1264_v11, %v1262_v42 }
 0x3b9   : > { %v1271_v10 = vadd.f32 %v1649_v62, %v1267_v63 }
 0x3bb   : > { %1275 = vst [vmem:[%s2664_s26 + $0x10] sm:$0xff] %v1271_v10 }
 0x3c8   : > { %v1238_v45 = vpop.f32.mrf.mxu0 }
 0x3ca   : > { %v1252_v31 = vpop.f32.mrf.mxu1 }
 0x3cb   : > { %v1253_v22 = vadd.f32 %v1252_v31, %v1238_v45 }
 0x3cd   : > { %v1261_v6 = vmul.f32 %v1647_v28, %v1253_v22 }
 0x3cf   : > { %v1266_v7 = vmul.f32 %v1264_v11, %v1261_v6 }
 0x3d0   : > { %v1240_v32 = vpop.f32.mrf.mxu0 }
 0x3d1   : > { %v1270_v2 = vadd.f32 %v1650_v33, %v1266_v7 }
 0x3d2   : > { %v1254_v20 = vpop.f32.mrf.mxu1 }
 0x3d3   : > { %1274 = vst [vmem:[%s2664_s26 + $0x8] sm:$0xff] %v1270_v2  ;;  %v1255_v58 = vadd.f32 %v1254_v20, %v1240_v32 }
 0x3d5   : > { %v1263_v9 = vmul.f32 %v1647_v28, %v1255_v58 }
 0x3d7   : > { %v1268_v61 = vmul.f32 %v1264_v11, %v1263_v9 }
 0x3d9   : > { %v1272_v12 = vadd.f32 %v1651_v56, %v1268_v61 }
 0x3db   : > { %1276 = vst [vmem:[%s2664_s26 + $0x18] sm:$0xff] %v1272_v12 }
 0x3dc   : > { %1709 = shalt.err (!%p1706_p8)
}
 0x3dd   : > { %s1754_s17 = smov 256   ;;  %s1755_s19 = smov 16  }
 0x3de   : > { %1461 = dma.vmem_to_hbm [thread:$0]  (%p1827_p5), %s1291_s9, 512, %s1293_s10, %s1278_s0, %s1754_s17, %s1754_s17, %s1755_s19  }
 0x3df PF: > { %p1473_p9 = scmp.ge.s32.totalorder %s1748_s23, 2  ;;  %s1307_s24 = sand.u32 1, %s1736_s20  }
 0x3e0   : > { %s1308_s26 = scalar_lea.sflag [#allocation5], %s1307_s24 }
 0x3e1   : > { %p1468_p10 = pnand %p1473_p9, %p1831_p6 }
 0x3e3   : > { %p1469_p11 = pneg %p1468_p10 }
 0x3e5   : > { %1731 = dma.done.wait (%p1469_p11), %s1308_s26, 512  }
 0x3e6   : > { %1733 = vsyncadd (%p1469_p11), %s1308_s26, 4294966784  ;;  %p17_p12 = scmp.ge.s32.totalorder %s1814_s25, 4   ;;  %s2854_s20 = smov %s1740_s21 }
 0x3e7   : > { %s2855_s21 = smov %s1744_s22  ;;  %s2856_s22 = smov %s1825_s28 }
 0x3e8   : > { %s2857_s23 = smov %s1814_s25  ;;  %19 = sbr.rel (!%p17_p12) target bundleno = 6 (0x6), region = 80 }
 0x3ed   :  { %1314 = vsyncpa [#allocation4], 1 }
 0x3ee   :  { %1316 = vsyncpa [#allocation4 + $0x1], 1 }
 0x3ef   :  { %1317 = vsyncpa [#allocation5], 1 }
 0x3f0   :  { %1319 = vsyncpa [#allocation5 + $0x1], 1 }

</bundles_post_ra>
